<compile_context>
chip_gen: v7x
topology: tpu7x:2x2x1
jax: 0.10.0
libtpu: 0.0.40
codegen_flags: <defaults>
</compile_context>

<pallas_src>
import functools

import jax
import jax.numpy as jnp
from jax.experimental import pallas as pl
from jax.experimental.pallas import tpu as pltpu

HP = 128  # conv2 / output channel pad so the final store is lane-dense


# ----------------------------- fused kernel -----------------------------

def _make_fused_kernel(L, B, H, hp):
    SIG = 3 * H  # lanes [0, 3H) are sigmoid gates (i, f, o); [3H, 4H) is tanh gate (g)

    def kernel(xc_ref, w1_ref, b1_ref, wih_ref, whh_ref, bl_ref, w2_ref, b2_ref, o_ref):
        f32, bf16 = jnp.float32, jnp.bfloat16

        # ---- Conv1d(k=3, p=1) + folded BN + ReLU, all 3 taps in one matmul ----
        # xc_ref: (L*B, 3*Cin) time-major im2col built in the wrapper (layout plumbing).
        xc = xc_ref[...].astype(bf16)
        h1 = jnp.dot(xc, w1_ref[...], preferred_element_type=f32)          # (L*B, H)
        h1 = jnp.maximum(h1 + b1_ref[...], 0.0).astype(bf16)

        # ---- LSTM input projection hoisted out of the recurrence ----
        gates_x = jnp.dot(h1, wih_ref[...], preferred_element_type=f32) + bl_ref[...]  # (L*B, 4H)

        whh = whh_ref[...]                                                  # (H, 4H) bf16, loop-invariant

        # sigmoid(x) == 0.5*tanh(0.5*x) + 0.5 -> one EUP tanh covers all 4 gates.
        # (hoisted constants; gates are packed/ordered i, f, o, g)
        lane = jax.lax.broadcasted_iota(jnp.int32, (B, 4 * H), 1)
        half = jnp.where(lane < SIG, 0.5, 1.0).astype(f32)
        offs = jnp.where(lane < SIG, 0.5, 0.0).astype(f32)

        # ---- LSTM recurrence (batch_first, h0 = c0 = 0), fully unrolled ----
        h_bf = jnp.zeros((B, H), bf16)
        c = jnp.zeros((B, H), f32)
        hs = []
        for t in range(L):                                                  # static trip count
            pre = gates_x[t * B:(t + 1) * B, :] + jnp.dot(
                h_bf, whh, preferred_element_type=f32)                      # (B, 4H)
            act = jnp.tanh(pre * half) * half + offs                        # i,f,o=sigmoid; g=tanh
            i_g = act[:, 0 * H:1 * H]
            f_g = act[:, 1 * H:2 * H]
            o_g = act[:, 2 * H:3 * H]
            g_g = act[:, 3 * H:4 * H]
            c = f_g * c + i_g * g_g
            h = o_g * jnp.tanh(c)                                           # (B, H) f32
            h_bf = h.astype(bf16)
            hs.append(h)                                                    # register-resident hseq

        # ---- Conv1d(k=3, p=1) + folded BN + ReLU over the hidden sequence ----
        # Build the 3-tap im2col by shifting whole B-row blocks (time-major rows).
        hseq = jnp.concatenate(hs, axis=0)                                  # (L*B, H)
        zrow = jnp.zeros((B, H), f32)
        left = jnp.concatenate([zrow, hseq[:-B]], axis=0)                   # h[t-1] (zero pad)
        right = jnp.concatenate([hseq[B:], zrow], axis=0)                   # h[t+1] (zero pad)
        hcat = jnp.concatenate([left, hseq, right], axis=1).astype(bf16)    # (L*B, 3H)
        y2 = jnp.dot(hcat, w2_ref[...], preferred_element_type=f32)         # (L*B, HP)
        y2 = jnp.maximum(y2 + b2_ref[...], 0.0)

        # ---- MaxPool1d(2) over time: pair of consecutive B-row blocks ----
        y2r = y2.reshape(L // 2, 2 * B, hp)
        o_ref[...] = jnp.maximum(y2r[:, :B, :], y2r[:, B:, :]).astype(o_ref.dtype)

    return kernel


def _fused_call(xc, p, *, B, L, Cin, H):
    hp = p["w2"].shape[-1]
    Lout = L // 2
    return pl.pallas_call(
        _make_fused_kernel(L, B, H, hp),
        out_shape=jax.ShapeDtypeStruct((Lout, B, hp), jnp.float32),
        grid=(1,),
        in_specs=[
            pl.BlockSpec((L * B, 3 * Cin), lambda i: (0, 0)),   # conv1 im2col
            pl.BlockSpec((3 * Cin, H), lambda i: (0, 0)),       # w1 (fused taps, bf16)
            pl.BlockSpec((1, H), lambda i: (0, 0)),             # b1 (BN folded)
            pl.BlockSpec((H, 4 * H), lambda i: (0, 0)),         # wih (packed gates, bf16)
            pl.BlockSpec((H, 4 * H), lambda i: (0, 0)),         # whh (packed gates, bf16)
            pl.BlockSpec((1, 4 * H), lambda i: (0, 0)),         # b_ih + b_hh
            pl.BlockSpec((3 * H, hp), lambda i: (0, 0)),        # w2 (fused taps, out-padded, bf16)
            pl.BlockSpec((1, hp), lambda i: (0, 0)),            # b2 (BN folded, out-padded)
        ],
        out_specs=pl.BlockSpec((Lout, B, hp), lambda i: (0, 0, 0)),
        compiler_params=pltpu.CompilerParams(
            dimension_semantics=("arbitrary",)),
    )(xc, p["w1"], p["b1"], p["wih"], p["whh"], p["b_lstm"], p["w2"], p["b2"])


# ----------------------------- parameters -----------------------------

def init_params(key, in_channels, hidden_dim):
    """Raw module parameters (our own init, PyTorch-like semantics/layouts)."""
    H = hidden_dim
    ks = jax.random.split(key, 8)
    s = 0.1
    bn = lambda: dict(gamma=jnp.ones((H,), jnp.float32), beta=jnp.zeros((H,), jnp.float32),
                      mean=jnp.zeros((H,), jnp.float32), var=jnp.ones((H,), jnp.float32))
    return {
        "w1": jax.random.normal(ks[0], (3, in_channels, H), jnp.float32) * s,   # (tap, Cin, Cout)
        "b1": jax.random.normal(ks[1], (H,), jnp.float32) * s,
        "wih": jax.random.normal(ks[2], (H, 4 * H), jnp.float32) * s,           # gate order i,f,g,o
        "whh": jax.random.normal(ks[3], (H, 4 * H), jnp.float32) * s,
        "b_ih": jax.random.normal(ks[4], (4 * H,), jnp.float32) * s,
        "b_hh": jax.random.normal(ks[5], (4 * H,), jnp.float32) * s,
        "w2": jax.random.normal(ks[6], (3, H, H), jnp.float32) * s,             # (tap, Cin, Cout)
        "b2": jax.random.normal(ks[7], (H,), jnp.float32) * s,
        "bn1": bn(), "bn2": bn(),
    }


def prepare_params(p, hidden_dim, hp=HP, eps=1e-5):
    """Fold eval-mode BatchNorm + conv bias into the convs, fuse conv taps into single
    matmul RHS matrices, pack & reorder LSTM gates to (i, f, o, g), and cast all matmul
    weights to bf16.  Conv2 output channels are zero-padded H -> hp=128 so the kernel's
    final store is lane-dense (padded channels sliced off in the wrapper)."""
    H = hidden_dim

    def bn_fold(bn):
        scale = bn["gamma"] / jnp.sqrt(bn["var"] + eps)
        shift = bn["beta"] - bn["mean"] * scale
        return scale, shift

    s1, t1 = bn_fold(p["bn1"])
    s2, t2 = bn_fold(p["bn2"])

    # conv1: fold BN into out channels, fuse 3 taps -> (3*Cin, H).
    w1 = p["w1"] * s1[None, None, :]
    b1 = p["b1"] * s1 + t1
    k, cin, _ = p["w1"].shape
    w1cat = w1.reshape(k * cin, H).astype(jnp.bfloat16)
    b1 = b1.reshape(1, H).astype(jnp.float32)

    # LSTM: reorder gate blocks (i, f, g, o) -> (i, f, o, g) so the sigmoid gates are one
    # contiguous 3H lane block and tanh(g) is the trailing H block.
    def reorder(w):
        gi = w[..., 0 * H:1 * H]
        gf = w[..., 1 * H:2 * H]
        gg = w[..., 2 * H:3 * H]
        go = w[..., 3 * H:4 * H]
        return jnp.concatenate([gi, gf, go, gg], axis=-1)

    wih = reorder(p["wih"]).astype(jnp.bfloat16)                         # (H, 4H)
    whh = reorder(p["whh"]).astype(jnp.bfloat16)                         # (H, 4H)
    b_l = reorder((p["b_ih"] + p["b_hh"])[None, :]).astype(jnp.float32)  # (1, 4H)

    # conv2: fold BN, fuse 3 taps -> (3H, H), zero-pad output channels H -> hp.
    w2 = p["w2"] * s2[None, None, :]
    b2 = p["b2"] * s2 + t2
    w2cat = jnp.zeros((3 * H, hp), jnp.float32).at[:, :H].set(w2.reshape(3 * H, H))
    w2cat = w2cat.astype(jnp.bfloat16)
    b2p = jnp.zeros((1, hp), jnp.float32).at[0, :H].set(b2)

    return {"w1": w1cat, "b1": b1, "wih": wih, "whh": whh, "b_lstm": b_l,
            "w2": w2cat, "b2": b2p}


# ----------------------------- forward -----------------------------

def bottleneck_lstm_forward(x_ncl, prep, hidden_dim):
    # x_ncl: (B, C_in, L) -- PyTorch NCL input.
    B, Cin, L = x_ncl.shape
    assert L % 2 == 0, "MaxPool1d(2) expects even L (floor mode would drop the tail)"
    H = hidden_dim

    # Time-major channel-last + conv1 im2col (pure layout plumbing, tiny tensors).
    x = jnp.transpose(x_ncl, (2, 0, 1))                     # (L, B, Cin)
    xp = jnp.pad(x, ((1, 1), (0, 0), (0, 0)))               # conv1 padding=1
    xc = jnp.concatenate([xp[0:L], xp[1:L + 1], xp[2:L + 2]], axis=-1)   # (L, B, 3*Cin)
    xc = xc.reshape(L * B, 3 * Cin)                         # rows are (t*B + b)

    y = _fused_call(xc, prep, B=B, L=L, Cin=Cin, H=H)       # (L//2, B, HP)
    y = y[:, :, :H]                                         # drop padded output channels
    return jnp.transpose(y, (1, 2, 0))                      # (B, H, L//2) -- PyTorch NCL output


if __name__ == "__main__":
    B, C_IN, L, HIDDEN = 2, 4, 16, 32
    key = jax.random.PRNGKey(0)
    k_x, k_p = jax.random.split(key)
    x = jax.random.normal(k_x, (B, C_IN, L), jnp.float32)

    raw = init_params(k_p, C_IN, HIDDEN)
    prep = prepare_params(raw, HIDDEN)

    fwd = jax.jit(functools.partial(bottleneck_lstm_forward, hidden_dim=HIDDEN))
    out = jax.block_until_ready(fwd(x, prep))

    assert out.shape == (B, HIDDEN, L // 2), out.shape
    assert bool(jnp.all(jnp.isfinite(out)))
    print("KERNEL_OK")
</pallas_src>

<mosaic_0001>
module attributes {stable_mosaic.version = 11 : i64} {
  func.func @kernel(%arg0: i32, %arg1: memref<32x12xf32, #tpu.memory_space<vmem>>, %arg2: memref<12x32xbf16, #tpu.memory_space<vmem>>, %arg3: memref<1x32xf32, #tpu.memory_space<vmem>>, %arg4: memref<32x128xbf16, #tpu.memory_space<vmem>>, %arg5: memref<32x128xbf16, #tpu.memory_space<vmem>>, %arg6: memref<1x128xf32, #tpu.memory_space<vmem>>, %arg7: memref<96x128xbf16, #tpu.memory_space<vmem>>, %arg8: memref<1x128xf32, #tpu.memory_space<vmem>>, %arg9: memref<8x2x128xf32, #tpu.memory_space<vmem>>) attributes {dimension_semantics = [#tpu.dimension_semantics<arbitrary>], iteration_bounds = array<i64: 1>, scalar_prefetch = 0 : i64, scratch_operands = 0 : i64, tpu.core_type = #tpu.core_type<tc>, window_params = [{pipeline_mode = #tpu.pipeline_mode<synchronous>, transform_indices = @transform_0, window_bounds = array<i64: 32, 12>}, {pipeline_mode = #tpu.pipeline_mode<synchronous>, transform_indices = @transform_1, window_bounds = array<i64: 12, 32>}, {pipeline_mode = #tpu.pipeline_mode<synchronous>, transform_indices = @transform_2, window_bounds = array<i64: 1, 32>}, {pipeline_mode = #tpu.pipeline_mode<synchronous>, transform_indices = @transform_3, window_bounds = array<i64: 32, 128>}, {pipeline_mode = #tpu.pipeline_mode<synchronous>, transform_indices = @transform_4, window_bounds = array<i64: 32, 128>}, {pipeline_mode = #tpu.pipeline_mode<synchronous>, transform_indices = @transform_5, window_bounds = array<i64: 1, 128>}, {pipeline_mode = #tpu.pipeline_mode<synchronous>, transform_indices = @transform_6, window_bounds = array<i64: 96, 128>}, {pipeline_mode = #tpu.pipeline_mode<synchronous>, transform_indices = @transform_7, window_bounds = array<i64: 1, 128>}, {pipeline_mode = #tpu.pipeline_mode<synchronous>, transform_indices = @transform_8, window_bounds = array<i64: 8, 2, 128>}]} {
    %c0 = arith.constant 0 : index
    %c0_0 = arith.constant 0 : index
    %0 = vector.load %arg1[%c0, %c0_0] : memref<32x12xf32, #tpu.memory_space<vmem>>, vector<32x12xf32>
    %1 = arith.truncf %0 : vector<32x12xf32> to vector<32x12xbf16>
    %c0_1 = arith.constant 0 : index
    %c0_2 = arith.constant 0 : index
    %2 = vector.load %arg2[%c0_1, %c0_2] : memref<12x32xbf16, #tpu.memory_space<vmem>>, vector<12x32xbf16>
    %cst = arith.constant dense<0.000000e+00> : vector<32x32xf32>
    %3 = tpu.matmul %1, %2, %cst {dimension_numbers = #tpu.dot_dimension_numbers<[1], [0], [0], [1], [0, 0, 1, 1], [], []>} : vector<32x12xbf16>, vector<12x32xbf16>, vector<32x32xf32> -> vector<32x32xf32>
    %c0_3 = arith.constant 0 : index
    %c0_4 = arith.constant 0 : index
    %4 = vector.load %arg3[%c0_3, %c0_4] : memref<1x32xf32, #tpu.memory_space<vmem>>, vector<1x32xf32>
    %5 = vector.broadcast %4 : vector<1x32xf32> to vector<32x32xf32>
    %6 = arith.addf %3, %5 : vector<32x32xf32>
    %cst_5 = arith.constant 0.000000e+00 : f32
    %7 = vector.broadcast %cst_5 : f32 to vector<32x32xf32>
    %8 = arith.maximumf %6, %7 : vector<32x32xf32>
    %9 = arith.truncf %8 : vector<32x32xf32> to vector<32x32xbf16>
    %c0_6 = arith.constant 0 : index
    %c0_7 = arith.constant 0 : index
    %10 = vector.load %arg4[%c0_6, %c0_7] : memref<32x128xbf16, #tpu.memory_space<vmem>>, vector<32x128xbf16>
    %cst_8 = arith.constant dense<0.000000e+00> : vector<32x128xf32>
    %11 = tpu.matmul %9, %10, %cst_8 {dimension_numbers = #tpu.dot_dimension_numbers<[1], [0], [0], [1], [0, 0, 1, 1], [], []>} : vector<32x32xbf16>, vector<32x128xbf16>, vector<32x128xf32> -> vector<32x128xf32>
    %c0_9 = arith.constant 0 : index
    %c0_10 = arith.constant 0 : index
    %12 = vector.load %arg6[%c0_9, %c0_10] : memref<1x128xf32, #tpu.memory_space<vmem>>, vector<1x128xf32>
    %13 = vector.broadcast %12 : vector<1x128xf32> to vector<32x128xf32>
    %14 = arith.addf %11, %13 : vector<32x128xf32>
    %c0_11 = arith.constant 0 : index
    %c0_12 = arith.constant 0 : index
    %15 = vector.load %arg5[%c0_11, %c0_12] : memref<32x128xbf16, #tpu.memory_space<vmem>>, vector<32x128xbf16>
    %16 = tpu.iota {dimensions = array<i32: 1>} : vector<2x128xi32>
    %c96_i32 = arith.constant 96 : i32
    %17 = vector.broadcast %c96_i32 : i32 to vector<2x128xi32>
    %18 = arith.cmpi slt, %16, %17 : vector<2x128xi32>
    %cst_13 = arith.constant 5.000000e-01 : f32
    %cst_14 = arith.constant 1.000000e+00 : f32
    %19 = vector.broadcast %cst_13 : f32 to vector<2x128xf32>
    %20 = vector.broadcast %cst_14 : f32 to vector<2x128xf32>
    %21 = arith.select %18, %19, %20 : vector<2x128xi1>, vector<2x128xf32>
    %c96_i32_15 = arith.constant 96 : i32
    %22 = vector.broadcast %c96_i32_15 : i32 to vector<2x128xi32>
    %23 = arith.cmpi slt, %16, %22 : vector<2x128xi32>
    %cst_16 = arith.constant 5.000000e-01 : f32
    %cst_17 = arith.constant 0.000000e+00 : f32
    %24 = vector.broadcast %cst_16 : f32 to vector<2x128xf32>
    %25 = vector.broadcast %cst_17 : f32 to vector<2x128xf32>
    %26 = arith.select %23, %24, %25 : vector<2x128xi1>, vector<2x128xf32>
    %cst_18 = arith.constant 0.000000e+00 : bf16
    %27 = vector.broadcast %cst_18 : bf16 to vector<2x32xbf16>
    %cst_19 = arith.constant 0.000000e+00 : f32
    %28 = vector.broadcast %cst_19 : f32 to vector<2x32xf32>
    %29 = vector.extract_strided_slice %14 {offsets = [0, 0], sizes = [2, 128], strides = [1, 1]} : vector<32x128xf32> to vector<2x128xf32>
    %cst_20 = arith.constant dense<0.000000e+00> : vector<2x128xf32>
    %30 = tpu.matmul %27, %15, %cst_20 {dimension_numbers = #tpu.dot_dimension_numbers<[1], [0], [0], [1], [0, 0, 1, 1], [], []>} : vector<2x32xbf16>, vector<32x128xbf16>, vector<2x128xf32> -> vector<2x128xf32>
    %31 = arith.addf %29, %30 : vector<2x128xf32>
    %32 = arith.mulf %31, %21 : vector<2x128xf32>
    %33 = math.tanh %32 : vector<2x128xf32>
    %34 = arith.mulf %33, %21 : vector<2x128xf32>
    %35 = arith.addf %34, %26 : vector<2x128xf32>
    %36 = vector.extract_strided_slice %35 {offsets = [0, 0], sizes = [2, 32], strides = [1, 1]} : vector<2x128xf32> to vector<2x32xf32>
    %37 = vector.extract_strided_slice %35 {offsets = [0, 32], sizes = [2, 32], strides = [1, 1]} : vector<2x128xf32> to vector<2x32xf32>
    %38 = vector.extract_strided_slice %35 {offsets = [0, 64], sizes = [2, 32], strides = [1, 1]} : vector<2x128xf32> to vector<2x32xf32>
    %39 = vector.extract_strided_slice %35 {offsets = [0, 96], sizes = [2, 32], strides = [1, 1]} : vector<2x128xf32> to vector<2x32xf32>
    %40 = arith.mulf %37, %28 : vector<2x32xf32>
    %41 = arith.mulf %36, %39 : vector<2x32xf32>
    %42 = arith.addf %40, %41 : vector<2x32xf32>
    %43 = math.tanh %42 : vector<2x32xf32>
    %44 = arith.mulf %38, %43 : vector<2x32xf32>
    %45 = arith.truncf %44 : vector<2x32xf32> to vector<2x32xbf16>
    %46 = vector.extract_strided_slice %14 {offsets = [2, 0], sizes = [2, 128], strides = [1, 1]} : vector<32x128xf32> to vector<2x128xf32>
    %cst_21 = arith.constant dense<0.000000e+00> : vector<2x128xf32>
    %47 = tpu.matmul %45, %15, %cst_21 {dimension_numbers = #tpu.dot_dimension_numbers<[1], [0], [0], [1], [0, 0, 1, 1], [], []>} : vector<2x32xbf16>, vector<32x128xbf16>, vector<2x128xf32> -> vector<2x128xf32>
    %48 = arith.addf %46, %47 : vector<2x128xf32>
    %49 = arith.mulf %48, %21 : vector<2x128xf32>
    %50 = math.tanh %49 : vector<2x128xf32>
    %51 = arith.mulf %50, %21 : vector<2x128xf32>
    %52 = arith.addf %51, %26 : vector<2x128xf32>
    %53 = vector.extract_strided_slice %52 {offsets = [0, 0], sizes = [2, 32], strides = [1, 1]} : vector<2x128xf32> to vector<2x32xf32>
    %54 = vector.extract_strided_slice %52 {offsets = [0, 32], sizes = [2, 32], strides = [1, 1]} : vector<2x128xf32> to vector<2x32xf32>
    %55 = vector.extract_strided_slice %52 {offsets = [0, 64], sizes = [2, 32], strides = [1, 1]} : vector<2x128xf32> to vector<2x32xf32>
    %56 = vector.extract_strided_slice %52 {offsets = [0, 96], sizes = [2, 32], strides = [1, 1]} : vector<2x128xf32> to vector<2x32xf32>
    %57 = arith.mulf %54, %42 : vector<2x32xf32>
    %58 = arith.mulf %53, %56 : vector<2x32xf32>
    %59 = arith.addf %57, %58 : vector<2x32xf32>
    %60 = math.tanh %59 : vector<2x32xf32>
    %61 = arith.mulf %55, %60 : vector<2x32xf32>
    %62 = arith.truncf %61 : vector<2x32xf32> to vector<2x32xbf16>
    %63 = vector.extract_strided_slice %14 {offsets = [4, 0], sizes = [2, 128], strides = [1, 1]} : vector<32x128xf32> to vector<2x128xf32>
    %cst_22 = arith.constant dense<0.000000e+00> : vector<2x128xf32>
    %64 = tpu.matmul %62, %15, %cst_22 {dimension_numbers = #tpu.dot_dimension_numbers<[1], [0], [0], [1], [0, 0, 1, 1], [], []>} : vector<2x32xbf16>, vector<32x128xbf16>, vector<2x128xf32> -> vector<2x128xf32>
    %65 = arith.addf %63, %64 : vector<2x128xf32>
    %66 = arith.mulf %65, %21 : vector<2x128xf32>
    %67 = math.tanh %66 : vector<2x128xf32>
    %68 = arith.mulf %67, %21 : vector<2x128xf32>
    %69 = arith.addf %68, %26 : vector<2x128xf32>
    %70 = vector.extract_strided_slice %69 {offsets = [0, 0], sizes = [2, 32], strides = [1, 1]} : vector<2x128xf32> to vector<2x32xf32>
    %71 = vector.extract_strided_slice %69 {offsets = [0, 32], sizes = [2, 32], strides = [1, 1]} : vector<2x128xf32> to vector<2x32xf32>
    %72 = vector.extract_strided_slice %69 {offsets = [0, 64], sizes = [2, 32], strides = [1, 1]} : vector<2x128xf32> to vector<2x32xf32>
    %73 = vector.extract_strided_slice %69 {offsets = [0, 96], sizes = [2, 32], strides = [1, 1]} : vector<2x128xf32> to vector<2x32xf32>
    %74 = arith.mulf %71, %59 : vector<2x32xf32>
    %75 = arith.mulf %70, %73 : vector<2x32xf32>
    %76 = arith.addf %74, %75 : vector<2x32xf32>
    %77 = math.tanh %76 : vector<2x32xf32>
    %78 = arith.mulf %72, %77 : vector<2x32xf32>
    %79 = arith.truncf %78 : vector<2x32xf32> to vector<2x32xbf16>
    %80 = vector.extract_strided_slice %14 {offsets = [6, 0], sizes = [2, 128], strides = [1, 1]} : vector<32x128xf32> to vector<2x128xf32>
    %cst_23 = arith.constant dense<0.000000e+00> : vector<2x128xf32>
    %81 = tpu.matmul %79, %15, %cst_23 {dimension_numbers = #tpu.dot_dimension_numbers<[1], [0], [0], [1], [0, 0, 1, 1], [], []>} : vector<2x32xbf16>, vector<32x128xbf16>, vector<2x128xf32> -> vector<2x128xf32>
    %82 = arith.addf %80, %81 : vector<2x128xf32>
    %83 = arith.mulf %82, %21 : vector<2x128xf32>
    %84 = math.tanh %83 : vector<2x128xf32>
    %85 = arith.mulf %84, %21 : vector<2x128xf32>
    %86 = arith.addf %85, %26 : vector<2x128xf32>
    %87 = vector.extract_strided_slice %86 {offsets = [0, 0], sizes = [2, 32], strides = [1, 1]} : vector<2x128xf32> to vector<2x32xf32>
    %88 = vector.extract_strided_slice %86 {offsets = [0, 32], sizes = [2, 32], strides = [1, 1]} : vector<2x128xf32> to vector<2x32xf32>
    %89 = vector.extract_strided_slice %86 {offsets = [0, 64], sizes = [2, 32], strides = [1, 1]} : vector<2x128xf32> to vector<2x32xf32>
    %90 = vector.extract_strided_slice %86 {offsets = [0, 96], sizes = [2, 32], strides = [1, 1]} : vector<2x128xf32> to vector<2x32xf32>
    %91 = arith.mulf %88, %76 : vector<2x32xf32>
    %92 = arith.mulf %87, %90 : vector<2x32xf32>
    %93 = arith.addf %91, %92 : vector<2x32xf32>
    %94 = math.tanh %93 : vector<2x32xf32>
    %95 = arith.mulf %89, %94 : vector<2x32xf32>
    %96 = arith.truncf %95 : vector<2x32xf32> to vector<2x32xbf16>
    %97 = vector.extract_strided_slice %14 {offsets = [8, 0], sizes = [2, 128], strides = [1, 1]} : vector<32x128xf32> to vector<2x128xf32>
    %cst_24 = arith.constant dense<0.000000e+00> : vector<2x128xf32>
    %98 = tpu.matmul %96, %15, %cst_24 {dimension_numbers = #tpu.dot_dimension_numbers<[1], [0], [0], [1], [0, 0, 1, 1], [], []>} : vector<2x32xbf16>, vector<32x128xbf16>, vector<2x128xf32> -> vector<2x128xf32>
    %99 = arith.addf %97, %98 : vector<2x128xf32>
    %100 = arith.mulf %99, %21 : vector<2x128xf32>
    %101 = math.tanh %100 : vector<2x128xf32>
    %102 = arith.mulf %101, %21 : vector<2x128xf32>
    %103 = arith.addf %102, %26 : vector<2x128xf32>
    %104 = vector.extract_strided_slice %103 {offsets = [0, 0], sizes = [2, 32], strides = [1, 1]} : vector<2x128xf32> to vector<2x32xf32>
    %105 = vector.extract_strided_slice %103 {offsets = [0, 32], sizes = [2, 32], strides = [1, 1]} : vector<2x128xf32> to vector<2x32xf32>
    %106 = vector.extract_strided_slice %103 {offsets = [0, 64], sizes = [2, 32], strides = [1, 1]} : vector<2x128xf32> to vector<2x32xf32>
    %107 = vector.extract_strided_slice %103 {offsets = [0, 96], sizes = [2, 32], strides = [1, 1]} : vector<2x128xf32> to vector<2x32xf32>
    %108 = arith.mulf %105, %93 : vector<2x32xf32>
    %109 = arith.mulf %104, %107 : vector<2x32xf32>
    %110 = arith.addf %108, %109 : vector<2x32xf32>
    %111 = math.tanh %110 : vector<2x32xf32>
    %112 = arith.mulf %106, %111 : vector<2x32xf32>
    %113 = arith.truncf %112 : vector<2x32xf32> to vector<2x32xbf16>
    %114 = vector.extract_strided_slice %14 {offsets = [10, 0], sizes = [2, 128], strides = [1, 1]} : vector<32x128xf32> to vector<2x128xf32>
    %cst_25 = arith.constant dense<0.000000e+00> : vector<2x128xf32>
    %115 = tpu.matmul %113, %15, %cst_25 {dimension_numbers = #tpu.dot_dimension_numbers<[1], [0], [0], [1], [0, 0, 1, 1], [], []>} : vector<2x32xbf16>, vector<32x128xbf16>, vector<2x128xf32> -> vector<2x128xf32>
    %116 = arith.addf %114, %115 : vector<2x128xf32>
    %117 = arith.mulf %116, %21 : vector<2x128xf32>
    %118 = math.tanh %117 : vector<2x128xf32>
    %119 = arith.mulf %118, %21 : vector<2x128xf32>
    %120 = arith.addf %119, %26 : vector<2x128xf32>
    %121 = vector.extract_strided_slice %120 {offsets = [0, 0], sizes = [2, 32], strides = [1, 1]} : vector<2x128xf32> to vector<2x32xf32>
    %122 = vector.extract_strided_slice %120 {offsets = [0, 32], sizes = [2, 32], strides = [1, 1]} : vector<2x128xf32> to vector<2x32xf32>
    %123 = vector.extract_strided_slice %120 {offsets = [0, 64], sizes = [2, 32], strides = [1, 1]} : vector<2x128xf32> to vector<2x32xf32>
    %124 = vector.extract_strided_slice %120 {offsets = [0, 96], sizes = [2, 32], strides = [1, 1]} : vector<2x128xf32> to vector<2x32xf32>
    %125 = arith.mulf %122, %110 : vector<2x32xf32>
    %126 = arith.mulf %121, %124 : vector<2x32xf32>
    %127 = arith.addf %125, %126 : vector<2x32xf32>
    %128 = math.tanh %127 : vector<2x32xf32>
    %129 = arith.mulf %123, %128 : vector<2x32xf32>
    %130 = arith.truncf %129 : vector<2x32xf32> to vector<2x32xbf16>
    %131 = vector.extract_strided_slice %14 {offsets = [12, 0], sizes = [2, 128], strides = [1, 1]} : vector<32x128xf32> to vector<2x128xf32>
    %cst_26 = arith.constant dense<0.000000e+00> : vector<2x128xf32>
    %132 = tpu.matmul %130, %15, %cst_26 {dimension_numbers = #tpu.dot_dimension_numbers<[1], [0], [0], [1], [0, 0, 1, 1], [], []>} : vector<2x32xbf16>, vector<32x128xbf16>, vector<2x128xf32> -> vector<2x128xf32>
    %133 = arith.addf %131, %132 : vector<2x128xf32>
    %134 = arith.mulf %133, %21 : vector<2x128xf32>
    %135 = math.tanh %134 : vector<2x128xf32>
    %136 = arith.mulf %135, %21 : vector<2x128xf32>
    %137 = arith.addf %136, %26 : vector<2x128xf32>
    %138 = vector.extract_strided_slice %137 {offsets = [0, 0], sizes = [2, 32], strides = [1, 1]} : vector<2x128xf32> to vector<2x32xf32>
    %139 = vector.extract_strided_slice %137 {offsets = [0, 32], sizes = [2, 32], strides = [1, 1]} : vector<2x128xf32> to vector<2x32xf32>
    %140 = vector.extract_strided_slice %137 {offsets = [0, 64], sizes = [2, 32], strides = [1, 1]} : vector<2x128xf32> to vector<2x32xf32>
    %141 = vector.extract_strided_slice %137 {offsets = [0, 96], sizes = [2, 32], strides = [1, 1]} : vector<2x128xf32> to vector<2x32xf32>
    %142 = arith.mulf %139, %127 : vector<2x32xf32>
    %143 = arith.mulf %138, %141 : vector<2x32xf32>
    %144 = arith.addf %142, %143 : vector<2x32xf32>
    %145 = math.tanh %144 : vector<2x32xf32>
    %146 = arith.mulf %140, %145 : vector<2x32xf32>
    %147 = arith.truncf %146 : vector<2x32xf32> to vector<2x32xbf16>
    %148 = vector.extract_strided_slice %14 {offsets = [14, 0], sizes = [2, 128], strides = [1, 1]} : vector<32x128xf32> to vector<2x128xf32>
    %cst_27 = arith.constant dense<0.000000e+00> : vector<2x128xf32>
    %149 = tpu.matmul %147, %15, %cst_27 {dimension_numbers = #tpu.dot_dimension_numbers<[1], [0], [0], [1], [0, 0, 1, 1], [], []>} : vector<2x32xbf16>, vector<32x128xbf16>, vector<2x128xf32> -> vector<2x128xf32>
    %150 = arith.addf %148, %149 : vector<2x128xf32>
    %151 = arith.mulf %150, %21 : vector<2x128xf32>
    %152 = math.tanh %151 : vector<2x128xf32>
    %153 = arith.mulf %152, %21 : vector<2x128xf32>
    %154 = arith.addf %153, %26 : vector<2x128xf32>
    %155 = vector.extract_strided_slice %154 {offsets = [0, 0], sizes = [2, 32], strides = [1, 1]} : vector<2x128xf32> to vector<2x32xf32>
    %156 = vector.extract_strided_slice %154 {offsets = [0, 32], sizes = [2, 32], strides = [1, 1]} : vector<2x128xf32> to vector<2x32xf32>
    %157 = vector.extract_strided_slice %154 {offsets = [0, 64], sizes = [2, 32], strides = [1, 1]} : vector<2x128xf32> to vector<2x32xf32>
    %158 = vector.extract_strided_slice %154 {offsets = [0, 96], sizes = [2, 32], strides = [1, 1]} : vector<2x128xf32> to vector<2x32xf32>
    %159 = arith.mulf %156, %144 : vector<2x32xf32>
    %160 = arith.mulf %155, %158 : vector<2x32xf32>
    %161 = arith.addf %159, %160 : vector<2x32xf32>
    %162 = math.tanh %161 : vector<2x32xf32>
    %163 = arith.mulf %157, %162 : vector<2x32xf32>
    %164 = arith.truncf %163 : vector<2x32xf32> to vector<2x32xbf16>
    %165 = vector.extract_strided_slice %14 {offsets = [16, 0], sizes = [2, 128], strides = [1, 1]} : vector<32x128xf32> to vector<2x128xf32>
    %cst_28 = arith.constant dense<0.000000e+00> : vector<2x128xf32>
    %166 = tpu.matmul %164, %15, %cst_28 {dimension_numbers = #tpu.dot_dimension_numbers<[1], [0], [0], [1], [0, 0, 1, 1], [], []>} : vector<2x32xbf16>, vector<32x128xbf16>, vector<2x128xf32> -> vector<2x128xf32>
    %167 = arith.addf %165, %166 : vector<2x128xf32>
    %168 = arith.mulf %167, %21 : vector<2x128xf32>
    %169 = math.tanh %168 : vector<2x128xf32>
    %170 = arith.mulf %169, %21 : vector<2x128xf32>
    %171 = arith.addf %170, %26 : vector<2x128xf32>
    %172 = vector.extract_strided_slice %171 {offsets = [0, 0], sizes = [2, 32], strides = [1, 1]} : vector<2x128xf32> to vector<2x32xf32>
    %173 = vector.extract_strided_slice %171 {offsets = [0, 32], sizes = [2, 32], strides = [1, 1]} : vector<2x128xf32> to vector<2x32xf32>
    %174 = vector.extract_strided_slice %171 {offsets = [0, 64], sizes = [2, 32], strides = [1, 1]} : vector<2x128xf32> to vector<2x32xf32>
    %175 = vector.extract_strided_slice %171 {offsets = [0, 96], sizes = [2, 32], strides = [1, 1]} : vector<2x128xf32> to vector<2x32xf32>
    %176 = arith.mulf %173, %161 : vector<2x32xf32>
    %177 = arith.mulf %172, %175 : vector<2x32xf32>
    %178 = arith.addf %176, %177 : vector<2x32xf32>
    %179 = math.tanh %178 : vector<2x32xf32>
    %180 = arith.mulf %174, %179 : vector<2x32xf32>
    %181 = arith.truncf %180 : vector<2x32xf32> to vector<2x32xbf16>
    %182 = vector.extract_strided_slice %14 {offsets = [18, 0], sizes = [2, 128], strides = [1, 1]} : vector<32x128xf32> to vector<2x128xf32>
    %cst_29 = arith.constant dense<0.000000e+00> : vector<2x128xf32>
    %183 = tpu.matmul %181, %15, %cst_29 {dimension_numbers = #tpu.dot_dimension_numbers<[1], [0], [0], [1], [0, 0, 1, 1], [], []>} : vector<2x32xbf16>, vector<32x128xbf16>, vector<2x128xf32> -> vector<2x128xf32>
    %184 = arith.addf %182, %183 : vector<2x128xf32>
    %185 = arith.mulf %184, %21 : vector<2x128xf32>
    %186 = math.tanh %185 : vector<2x128xf32>
    %187 = arith.mulf %186, %21 : vector<2x128xf32>
    %188 = arith.addf %187, %26 : vector<2x128xf32>
    %189 = vector.extract_strided_slice %188 {offsets = [0, 0], sizes = [2, 32], strides = [1, 1]} : vector<2x128xf32> to vector<2x32xf32>
    %190 = vector.extract_strided_slice %188 {offsets = [0, 32], sizes = [2, 32], strides = [1, 1]} : vector<2x128xf32> to vector<2x32xf32>
    %191 = vector.extract_strided_slice %188 {offsets = [0, 64], sizes = [2, 32], strides = [1, 1]} : vector<2x128xf32> to vector<2x32xf32>
    %192 = vector.extract_strided_slice %188 {offsets = [0, 96], sizes = [2, 32], strides = [1, 1]} : vector<2x128xf32> to vector<2x32xf32>
    %193 = arith.mulf %190, %178 : vector<2x32xf32>
    %194 = arith.mulf %189, %192 : vector<2x32xf32>
    %195 = arith.addf %193, %194 : vector<2x32xf32>
    %196 = math.tanh %195 : vector<2x32xf32>
    %197 = arith.mulf %191, %196 : vector<2x32xf32>
    %198 = arith.truncf %197 : vector<2x32xf32> to vector<2x32xbf16>
    %199 = vector.extract_strided_slice %14 {offsets = [20, 0], sizes = [2, 128], strides = [1, 1]} : vector<32x128xf32> to vector<2x128xf32>
    %cst_30 = arith.constant dense<0.000000e+00> : vector<2x128xf32>
    %200 = tpu.matmul %198, %15, %cst_30 {dimension_numbers = #tpu.dot_dimension_numbers<[1], [0], [0], [1], [0, 0, 1, 1], [], []>} : vector<2x32xbf16>, vector<32x128xbf16>, vector<2x128xf32> -> vector<2x128xf32>
    %201 = arith.addf %199, %200 : vector<2x128xf32>
    %202 = arith.mulf %201, %21 : vector<2x128xf32>
    %203 = math.tanh %202 : vector<2x128xf32>
    %204 = arith.mulf %203, %21 : vector<2x128xf32>
    %205 = arith.addf %204, %26 : vector<2x128xf32>
    %206 = vector.extract_strided_slice %205 {offsets = [0, 0], sizes = [2, 32], strides = [1, 1]} : vector<2x128xf32> to vector<2x32xf32>
    %207 = vector.extract_strided_slice %205 {offsets = [0, 32], sizes = [2, 32], strides = [1, 1]} : vector<2x128xf32> to vector<2x32xf32>
    %208 = vector.extract_strided_slice %205 {offsets = [0, 64], sizes = [2, 32], strides = [1, 1]} : vector<2x128xf32> to vector<2x32xf32>
    %209 = vector.extract_strided_slice %205 {offsets = [0, 96], sizes = [2, 32], strides = [1, 1]} : vector<2x128xf32> to vector<2x32xf32>
    %210 = arith.mulf %207, %195 : vector<2x32xf32>
    %211 = arith.mulf %206, %209 : vector<2x32xf32>
    %212 = arith.addf %210, %211 : vector<2x32xf32>
    %213 = math.tanh %212 : vector<2x32xf32>
    %214 = arith.mulf %208, %213 : vector<2x32xf32>
    %215 = arith.truncf %214 : vector<2x32xf32> to vector<2x32xbf16>
    %216 = vector.extract_strided_slice %14 {offsets = [22, 0], sizes = [2, 128], strides = [1, 1]} : vector<32x128xf32> to vector<2x128xf32>
    %cst_31 = arith.constant dense<0.000000e+00> : vector<2x128xf32>
    %217 = tpu.matmul %215, %15, %cst_31 {dimension_numbers = #tpu.dot_dimension_numbers<[1], [0], [0], [1], [0, 0, 1, 1], [], []>} : vector<2x32xbf16>, vector<32x128xbf16>, vector<2x128xf32> -> vector<2x128xf32>
    %218 = arith.addf %216, %217 : vector<2x128xf32>
    %219 = arith.mulf %218, %21 : vector<2x128xf32>
    %220 = math.tanh %219 : vector<2x128xf32>
    %221 = arith.mulf %220, %21 : vector<2x128xf32>
    %222 = arith.addf %221, %26 : vector<2x128xf32>
    %223 = vector.extract_strided_slice %222 {offsets = [0, 0], sizes = [2, 32], strides = [1, 1]} : vector<2x128xf32> to vector<2x32xf32>
    %224 = vector.extract_strided_slice %222 {offsets = [0, 32], sizes = [2, 32], strides = [1, 1]} : vector<2x128xf32> to vector<2x32xf32>
    %225 = vector.extract_strided_slice %222 {offsets = [0, 64], sizes = [2, 32], strides = [1, 1]} : vector<2x128xf32> to vector<2x32xf32>
    %226 = vector.extract_strided_slice %222 {offsets = [0, 96], sizes = [2, 32], strides = [1, 1]} : vector<2x128xf32> to vector<2x32xf32>
    %227 = arith.mulf %224, %212 : vector<2x32xf32>
    %228 = arith.mulf %223, %226 : vector<2x32xf32>
    %229 = arith.addf %227, %228 : vector<2x32xf32>
    %230 = math.tanh %229 : vector<2x32xf32>
    %231 = arith.mulf %225, %230 : vector<2x32xf32>
    %232 = arith.truncf %231 : vector<2x32xf32> to vector<2x32xbf16>
    %233 = vector.extract_strided_slice %14 {offsets = [24, 0], sizes = [2, 128], strides = [1, 1]} : vector<32x128xf32> to vector<2x128xf32>
    %cst_32 = arith.constant dense<0.000000e+00> : vector<2x128xf32>
    %234 = tpu.matmul %232, %15, %cst_32 {dimension_numbers = #tpu.dot_dimension_numbers<[1], [0], [0], [1], [0, 0, 1, 1], [], []>} : vector<2x32xbf16>, vector<32x128xbf16>, vector<2x128xf32> -> vector<2x128xf32>
    %235 = arith.addf %233, %234 : vector<2x128xf32>
    %236 = arith.mulf %235, %21 : vector<2x128xf32>
    %237 = math.tanh %236 : vector<2x128xf32>
    %238 = arith.mulf %237, %21 : vector<2x128xf32>
    %239 = arith.addf %238, %26 : vector<2x128xf32>
    %240 = vector.extract_strided_slice %239 {offsets = [0, 0], sizes = [2, 32], strides = [1, 1]} : vector<2x128xf32> to vector<2x32xf32>
    %241 = vector.extract_strided_slice %239 {offsets = [0, 32], sizes = [2, 32], strides = [1, 1]} : vector<2x128xf32> to vector<2x32xf32>
    %242 = vector.extract_strided_slice %239 {offsets = [0, 64], sizes = [2, 32], strides = [1, 1]} : vector<2x128xf32> to vector<2x32xf32>
    %243 = vector.extract_strided_slice %239 {offsets = [0, 96], sizes = [2, 32], strides = [1, 1]} : vector<2x128xf32> to vector<2x32xf32>
    %244 = arith.mulf %241, %229 : vector<2x32xf32>
    %245 = arith.mulf %240, %243 : vector<2x32xf32>
    %246 = arith.addf %244, %245 : vector<2x32xf32>
    %247 = math.tanh %246 : vector<2x32xf32>
    %248 = arith.mulf %242, %247 : vector<2x32xf32>
    %249 = arith.truncf %248 : vector<2x32xf32> to vector<2x32xbf16>
    %250 = vector.extract_strided_slice %14 {offsets = [26, 0], sizes = [2, 128], strides = [1, 1]} : vector<32x128xf32> to vector<2x128xf32>
    %cst_33 = arith.constant dense<0.000000e+00> : vector<2x128xf32>
    %251 = tpu.matmul %249, %15, %cst_33 {dimension_numbers = #tpu.dot_dimension_numbers<[1], [0], [0], [1], [0, 0, 1, 1], [], []>} : vector<2x32xbf16>, vector<32x128xbf16>, vector<2x128xf32> -> vector<2x128xf32>
    %252 = arith.addf %250, %251 : vector<2x128xf32>
    %253 = arith.mulf %252, %21 : vector<2x128xf32>
    %254 = math.tanh %253 : vector<2x128xf32>
    %255 = arith.mulf %254, %21 : vector<2x128xf32>
    %256 = arith.addf %255, %26 : vector<2x128xf32>
    %257 = vector.extract_strided_slice %256 {offsets = [0, 0], sizes = [2, 32], strides = [1, 1]} : vector<2x128xf32> to vector<2x32xf32>
    %258 = vector.extract_strided_slice %256 {offsets = [0, 32], sizes = [2, 32], strides = [1, 1]} : vector<2x128xf32> to vector<2x32xf32>
    %259 = vector.extract_strided_slice %256 {offsets = [0, 64], sizes = [2, 32], strides = [1, 1]} : vector<2x128xf32> to vector<2x32xf32>
    %260 = vector.extract_strided_slice %256 {offsets = [0, 96], sizes = [2, 32], strides = [1, 1]} : vector<2x128xf32> to vector<2x32xf32>
    %261 = arith.mulf %258, %246 : vector<2x32xf32>
    %262 = arith.mulf %257, %260 : vector<2x32xf32>
    %263 = arith.addf %261, %262 : vector<2x32xf32>
    %264 = math.tanh %263 : vector<2x32xf32>
    %265 = arith.mulf %259, %264 : vector<2x32xf32>
    %266 = arith.truncf %265 : vector<2x32xf32> to vector<2x32xbf16>
    %267 = vector.extract_strided_slice %14 {offsets = [28, 0], sizes = [2, 128], strides = [1, 1]} : vector<32x128xf32> to vector<2x128xf32>
    %cst_34 = arith.constant dense<0.000000e+00> : vector<2x128xf32>
    %268 = tpu.matmul %266, %15, %cst_34 {dimension_numbers = #tpu.dot_dimension_numbers<[1], [0], [0], [1], [0, 0, 1, 1], [], []>} : vector<2x32xbf16>, vector<32x128xbf16>, vector<2x128xf32> -> vector<2x128xf32>
    %269 = arith.addf %267, %268 : vector<2x128xf32>
    %270 = arith.mulf %269, %21 : vector<2x128xf32>
    %271 = math.tanh %270 : vector<2x128xf32>
    %272 = arith.mulf %271, %21 : vector<2x128xf32>
    %273 = arith.addf %272, %26 : vector<2x128xf32>
    %274 = vector.extract_strided_slice %273 {offsets = [0, 0], sizes = [2, 32], strides = [1, 1]} : vector<2x128xf32> to vector<2x32xf32>
    %275 = vector.extract_strided_slice %273 {offsets = [0, 32], sizes = [2, 32], strides = [1, 1]} : vector<2x128xf32> to vector<2x32xf32>
    %276 = vector.extract_strided_slice %273 {offsets = [0, 64], sizes = [2, 32], strides = [1, 1]} : vector<2x128xf32> to vector<2x32xf32>
    %277 = vector.extract_strided_slice %273 {offsets = [0, 96], sizes = [2, 32], strides = [1, 1]} : vector<2x128xf32> to vector<2x32xf32>
    %278 = arith.mulf %275, %263 : vector<2x32xf32>
    %279 = arith.mulf %274, %277 : vector<2x32xf32>
    %280 = arith.addf %278, %279 : vector<2x32xf32>
    %281 = math.tanh %280 : vector<2x32xf32>
    %282 = arith.mulf %276, %281 : vector<2x32xf32>
    %283 = arith.truncf %282 : vector<2x32xf32> to vector<2x32xbf16>
    %284 = vector.extract_strided_slice %14 {offsets = [30, 0], sizes = [2, 128], strides = [1, 1]} : vector<32x128xf32> to vector<2x128xf32>
    %cst_35 = arith.constant dense<0.000000e+00> : vector<2x128xf32>
    %285 = tpu.matmul %283, %15, %cst_35 {dimension_numbers = #tpu.dot_dimension_numbers<[1], [0], [0], [1], [0, 0, 1, 1], [], []>} : vector<2x32xbf16>, vector<32x128xbf16>, vector<2x128xf32> -> vector<2x128xf32>
    %286 = arith.addf %284, %285 : vector<2x128xf32>
    %287 = arith.mulf %286, %21 : vector<2x128xf32>
    %288 = math.tanh %287 : vector<2x128xf32>
    %289 = arith.mulf %288, %21 : vector<2x128xf32>
    %290 = arith.addf %289, %26 : vector<2x128xf32>
    %291 = vector.extract_strided_slice %290 {offsets = [0, 0], sizes = [2, 32], strides = [1, 1]} : vector<2x128xf32> to vector<2x32xf32>
    %292 = vector.extract_strided_slice %290 {offsets = [0, 32], sizes = [2, 32], strides = [1, 1]} : vector<2x128xf32> to vector<2x32xf32>
    %293 = vector.extract_strided_slice %290 {offsets = [0, 64], sizes = [2, 32], strides = [1, 1]} : vector<2x128xf32> to vector<2x32xf32>
    %294 = vector.extract_strided_slice %290 {offsets = [0, 96], sizes = [2, 32], strides = [1, 1]} : vector<2x128xf32> to vector<2x32xf32>
    %295 = arith.mulf %292, %280 : vector<2x32xf32>
    %296 = arith.mulf %291, %294 : vector<2x32xf32>
    %297 = arith.addf %295, %296 : vector<2x32xf32>
    %298 = math.tanh %297 : vector<2x32xf32>
    %299 = arith.mulf %293, %298 : vector<2x32xf32>
    %300 = tpu.concatenate %44, %61, %78, %95, %112, %129, %146, %163, %180, %197, %214, %231, %248, %265, %282, %299 in 0 : vector<2x32xf32>, vector<2x32xf32>, vector<2x32xf32>, vector<2x32xf32>, vector<2x32xf32>, vector<2x32xf32>, vector<2x32xf32>, vector<2x32xf32>, vector<2x32xf32>, vector<2x32xf32>, vector<2x32xf32>, vector<2x32xf32>, vector<2x32xf32>, vector<2x32xf32>, vector<2x32xf32>, vector<2x32xf32> -> vector<32x32xf32>
    %cst_36 = arith.constant 0.000000e+00 : f32
    %301 = vector.broadcast %cst_36 : f32 to vector<2x32xf32>
    %302 = vector.extract_strided_slice %300 {offsets = [0, 0], sizes = [30, 32], strides = [1, 1]} : vector<32x32xf32> to vector<30x32xf32>
    %303 = tpu.concatenate %301, %302 in 0 : vector<2x32xf32>, vector<30x32xf32> -> vector<32x32xf32>
    %304 = vector.extract_strided_slice %300 {offsets = [2, 0], sizes = [30, 32], strides = [1, 1]} : vector<32x32xf32> to vector<30x32xf32>
    %305 = tpu.concatenate %304, %301 in 0 : vector<30x32xf32>, vector<2x32xf32> -> vector<32x32xf32>
    %306 = tpu.concatenate %303, %300, %305 in 1 : vector<32x32xf32>, vector<32x32xf32>, vector<32x32xf32> -> vector<32x96xf32>
    %307 = arith.truncf %306 : vector<32x96xf32> to vector<32x96xbf16>
    %c0_37 = arith.constant 0 : index
    %c0_38 = arith.constant 0 : index
    %308 = vector.load %arg7[%c0_37, %c0_38] : memref<96x128xbf16, #tpu.memory_space<vmem>>, vector<96x128xbf16>
    %cst_39 = arith.constant dense<0.000000e+00> : vector<32x128xf32>
    %309 = tpu.matmul %307, %308, %cst_39 {dimension_numbers = #tpu.dot_dimension_numbers<[1], [0], [0], [1], [0, 0, 1, 1], [], []>} : vector<32x96xbf16>, vector<96x128xbf16>, vector<32x128xf32> -> vector<32x128xf32>
    %c0_40 = arith.constant 0 : index
    %c0_41 = arith.constant 0 : index
    %310 = vector.load %arg8[%c0_40, %c0_41] : memref<1x128xf32, #tpu.memory_space<vmem>>, vector<1x128xf32>
    %311 = vector.broadcast %310 : vector<1x128xf32> to vector<32x128xf32>
    %312 = arith.addf %309, %311 : vector<32x128xf32>
    %cst_42 = arith.constant 0.000000e+00 : f32
    %313 = vector.broadcast %cst_42 : f32 to vector<32x128xf32>
    %314 = arith.maximumf %312, %313 : vector<32x128xf32>
    %315 = vector.shape_cast %314 : vector<32x128xf32> to vector<8x4x128xf32>
    %316 = vector.extract_strided_slice %315 {offsets = [0, 0, 0], sizes = [8, 2, 128], strides = [1, 1, 1]} : vector<8x4x128xf32> to vector<8x2x128xf32>
    %317 = vector.extract_strided_slice %315 {offsets = [0, 2, 0], sizes = [8, 2, 128], strides = [1, 1, 1]} : vector<8x4x128xf32> to vector<8x2x128xf32>
    %318 = arith.maximumf %316, %317 : vector<8x2x128xf32>
    %c0_43 = arith.constant 0 : index
    %c0_44 = arith.constant 0 : index
    %c0_45 = arith.constant 0 : index
    %319 = vector.load %arg9[%c0_43, %c0_44, %c0_45] : memref<8x2x128xf32, #tpu.memory_space<vmem>>, vector<8x2x128xf32>
    tpu.vector_store %arg9[%c0_43, %c0_44, %c0_45], %318 {strides = array<i32>} : memref<8x2x128xf32, #tpu.memory_space<vmem>>, vector<8x2x128xf32>,
    return
  }
  func.func @transform_0(%arg0: i32) -> (i32, i32) {
    %c0_i32 = arith.constant 0 : i32
    %c0_i32_0 = arith.constant 0 : i32
    %c0_i32_1 = arith.constant 0 : i32
    return %c0_i32, %c0_i32_0 : i32, i32
  }
  func.func @transform_1(%arg0: i32) -> (i32, i32) {
    %c0_i32 = arith.constant 0 : i32
    %c0_i32_0 = arith.constant 0 : i32
    %c0_i32_1 = arith.constant 0 : i32
    return %c0_i32, %c0_i32_0 : i32, i32
  }
  func.func @transform_2(%arg0: i32) -> (i32, i32) {
    %c0_i32 = arith.constant 0 : i32
    %c0_i32_0 = arith.constant 0 : i32
    %c0_i32_1 = arith.constant 0 : i32
    return %c0_i32, %c0_i32_0 : i32, i32
  }
  func.func @transform_3(%arg0: i32) -> (i32, i32) {
    %c0_i32 = arith.constant 0 : i32
    %c0_i32_0 = arith.constant 0 : i32
    %c0_i32_1 = arith.constant 0 : i32
    return %c0_i32, %c0_i32_0 : i32, i32
  }
  func.func @transform_4(%arg0: i32) -> (i32, i32) {
    %c0_i32 = arith.constant 0 : i32
    %c0_i32_0 = arith.constant 0 : i32
    %c0_i32_1 = arith.constant 0 : i32
    return %c0_i32, %c0_i32_0 : i32, i32
  }
  func.func @transform_5(%arg0: i32) -> (i32, i32) {
    %c0_i32 = arith.constant 0 : i32
    %c0_i32_0 = arith.constant 0 : i32
    %c0_i32_1 = arith.constant 0 : i32
    return %c0_i32, %c0_i32_0 : i32, i32
  }
  func.func @transform_6(%arg0: i32) -> (i32, i32) {
    %c0_i32 = arith.constant 0 : i32
    %c0_i32_0 = arith.constant 0 : i32
    %c0_i32_1 = arith.constant 0 : i32
    return %c0_i32, %c0_i32_0 : i32, i32
  }
  func.func @transform_7(%arg0: i32) -> (i32, i32) {
    %c0_i32 = arith.constant 0 : i32
    %c0_i32_0 = arith.constant 0 : i32
    %c0_i32_1 = arith.constant 0 : i32
    return %c0_i32, %c0_i32_0 : i32, i32
  }
  func.func @transform_8(%arg0: i32) -> (i32, i32, i32) {
    %c0_i32 = arith.constant 0 : i32
    %c0_i32_0 = arith.constant 0 : i32
    %c0_i32_1 = arith.constant 0 : i32
    %c0_i32_2 = arith.constant 0 : i32
    return %c0_i32, %c0_i32_0, %c0_i32_1 : i32, i32, i32
  }
}

</mosaic_0001>

<bundles_post_ra>
// kernel: bottleneck_lstm_forward.1
= control target key start
LH: loop header
LB: loop body
LE: loop exit
PB: predicated region body
PF: predicated region fallthrough
CT: control target
= control target key end

     0   :  { %vm57_vm0 = vcmask 1045504   ;;  %vm50_vm1 = vcmask 97280   ;;  %v2019_v11 = vmov 0.0   ;;  %vm2020_vm2 = vmmov 0   ;;  %s2024_s22 = smov 64   ;;  %s2025_s29 = smov 96   ;;  %s2477_s1 = inlined_call_operand.vmem [shape: bf16[12,32], index: 1, kind: input, shape index: {}]   ;;  %s2478_s0 = inlined_call_operand.vmem [shape: f32[32,12], index: 0, kind: input, shape index: {}]   ;;  %s2479_s3 = inlined_call_operand.vmem [shape: bf16[32,128], index: 3, kind: input, shape index: {}]   ;;  %s2480_s4 = inlined_call_operand.vmem [shape: bf16[32,128], index: 4, kind: input, shape index: {}]   ;;  %s2481_s2 = inlined_call_operand.vmem [shape: f32[1,32], index: 2, kind: input, shape index: {}]   ;;  %s2482_s5 = inlined_call_operand.vmem [shape: f32[1,128], index: 5, kind: input, shape index: {}]   ;;  %s2483_s6 = inlined_call_operand.vmem [shape: bf16[96,128], index: 6, kind: input, shape index: {}]   ;;  %s2484_s7 = inlined_call_operand.vmem [shape: f32[1,128], index: 7, kind: input, shape index: {}]   ;;  %s2485_s8 = inlined_call_operand.vmem [shape: f32[8,2,128], index: 8, kind: output, shape index: {}]  }
   0x1   :  { %v1944_v0 = vld [vmem:[%s2477_s1] sm:$0x3f]   ;;  %v31_v2 = vld [vmem:[%s2478_s0 + $0x8] sm:$0xff]  ;;  %v32_v3 = vld [vmem:[%s2478_s0 + $0x10] sm:$0xff]  ;;  %vm139_vm3 = vcmask 261120   ;;  %v2021_v28 = vmov 0   ;;  %v199_v29 = vlaneseq }
   0x2   :  { %v30_v1 = vld [vmem:[%s2478_s0] sm:$0xff]  ;;  %1916 = vmatprep.subr.msk.bf16.mxu0 %vm57_vm0, %v1944_v0  ;;  %v59_v4 = vsel %vm57_vm0, %v1944_v0, 0  ;;  %v33_v6 = vld [vmem:[%s2478_s0 + $0x18] sm:$0xff]  ;;  %v1946_v9 = vld [vmem:[%s2479_s3 + $0x8] sm:$0xff]   ;;  %v2022_v40 = vmov 1.0   ;;  %vm1408_vm5 = vcmask 1041408  }
   0x3   :  { %v34_v5 = vpack.c.bf16 %v31_v2, %v30_v1  ;;  %1759 = vmatpush3.bf16.msra.mxu0 %v59_v4  ;;  %v35_v7 = vpack.c.bf16 %v33_v6, %v32_v3  ;;  %v1945_v8 = vld [vmem:[%s2479_s3] sm:$0xff]   ;;  %v2106_v12 = vld [vmem:[%s2480_s4 + $0x8] sm:$0xff]   ;;  %v200_v34 = vand.u32 127, %v199_v29  ;;  %vm1410_vm6 = vcmask 1043456  }
   0x4   :  { %1764 = vmatprep.subr.bf16.mxu1 %v1945_v8  ;;  %v2097_v10 = vld [vmem:[%s2480_s4] sm:$0xff]   ;;  %1788 = vmatprep.subr.bf16.mxu0 %v2019_v11  ;;  %vm1474_vm7 = vcmask 523264   ;;  %vm1536_vm8 = vcmask 785408  }
   0x5   :  { %1760 = vmatprep.mubr.msk.bf16.mxu0 %vm50_vm1, %v34_v5  ;;  %1765 = vmatpush3.bf16.msra.mxu1 %v1945_v8  ;;  %v1652_v13 = vld [vmem:[%s2481_s2] ss:$0 sm:$0xff]  ;;  %vm201_vm4 = vcmp.lt.s32.totalorder %v200_v34, 96 }
   0x6   :  { %1761 = vmatmul.mubr.msk.bf16.vlgmr.msra.gmra.mrb[0].mxu0 %vm50_vm1, %v35_v7  ;;  %1766 = vmatprep.subr.bf16.mxu1 %v1946_v9  ;;  %v1656_v30 = vld [vmem:[%s2482_s5] ss:$0 sm:$0xff]  ;;  %v2140_v41 = vsel %vm201_vm4, 0.5, %v2022_v40  ;;  %v2145_v49 = vsel %vm201_vm4, 0.5, %v2019_v11  ;;  %s2023_s5 = smov 32  }
   0x7   :  { %1789 = vmatpush3.bf16.msra.mxu0 %v2097_v10  ;;  %1792 = vmatprep.mubr.msk.bf16.mxu0 %vm2020_vm2, %v2019_v11 }
   0x8   :  { %1790 = vmatprep.subr.bf16.mxu0 %v2019_v11 }
   0x9   :  { %1767 = vmatpush3.bf16.msra.mxu1 %v1946_v9 }
   0xa   :  { %1772 = vmatprep.subr.bf16.mxu1 %v2019_v11 }
   0xb   :  { %1791 = vmatpush3.bf16.msra.mxu0 %v2106_v12 }
   0xc   :  { %1804 = vmatprep.subr.bf16.mxu0 %v2019_v11 }
  0xd9   :  { %v1762_v14 = vpop.f32.mrb[0].mxu0 }
  0xda   :  { %v104_v15 = vadd.f32 %v1762_v14, %v1652_v13  ;;  %v95_v16 = vpop.f32.mrb[1].mxu0 }
  0xdb   :  { %v96_v17 = vadd.f32 %v1652_v13, %v95_v16  ;;  %v1763_v18 = vpop.f32.mrb[2].mxu0 }
  0xdc   :  { %v107_v19 = vadd.f32 %v1763_v18, %v1652_v13  ;;  %v98_v20 = vpop.f32.mrb[3].mxu0  ;;  %v112_v22 = vmax.f32 %v104_v15, 0.0 }
  0xdd   :  { %v99_v21 = vadd.f32 %v1652_v13, %v98_v20  ;;  %v110_v24 = vmax.f32 %v96_v17, 0.0 }
  0xde   :  { %v113_v23 = vmax.f32 %v107_v19, 0.0 }
  0xdf   :  { %v111_v25 = vmax.f32 %v99_v21, 0.0 }
  0xe0   :  { %v115_v26 = vpack.c.bf16 %v113_v23, %v112_v22 }
  0xe1   :  { %v114_v27 = vpack.c.bf16 %v111_v25, %v110_v24 }
  0xe3   :  { %1768 = vmatprep.mubr.msk.bf16.mxu1 %vm139_vm3, %v114_v27 }
  0xe4   :  { %1769 = vmatmul.mubr.msk.bf16.vlgmr.msra.gmra.mrb[0].mxu1 %vm139_vm3, %v115_v26 }
  0xe5   :  { %1773 = vmatpush3.bf16.msra.mxu1 %v2097_v10  ;;  %1776 = vmatprep.mubr.msk.bf16.mxu1 %vm2020_vm2, %v2019_v11 }
  0xe6   :  { %1774 = vmatprep.subr.bf16.mxu1 %v2019_v11 }
  0xe9   :  { %1775 = vmatpush3.bf16.msra.mxu1 %v2106_v12 }
  0xea   :  { %1780 = vmatprep.subr.bf16.mxu1 %v2019_v11 }
  0xec   :  { %1777 = vmatmul.mubr.bf16.vlgmr.msra.gmra.mrb[4].mxu1 %v2021_v28 }
  0xed   :  { %1781 = vmatpush3.bf16.msra.mxu1 %v2097_v10  ;;  %1784 = vmatprep.mubr.msk.bf16.mxu1 %vm2020_vm2, %v2019_v11 }
  0xee   :  { %1782 = vmatprep.subr.bf16.mxu1 %v2019_v11 }
  0xf1   :  { %1783 = vmatpush3.bf16.msra.mxu1 %v2106_v12 }
  0xf2   :  { %1796 = vmatprep.subr.bf16.mxu1 %v2019_v11 }
 0x1b7   :  { %v1770_v31 = vpop.f32.mrb[0].mxu1 }
 0x1b8   :  { %v2132_v32 = vadd.f32 %v1770_v31, %v1656_v30  ;;  %v180_v33 = vpop.f32.mrb[1].mxu1 }
 0x1b9   :  { %v1771_v35 = vpop.f32.mrb[2].mxu1  ;;  %v2138_v39 = vadd.f32 %v1656_v30, %v180_v33 }
 0x1ba   :  { %v2134_v36 = vadd.f32 %v1771_v35, %v1656_v30  ;;  %v183_v37 = vpop.f32.mrb[3].mxu1 }
 0x1bb   :  { %v2136_v38 = vadd.f32 %v1656_v30, %v183_v37 }
 0x1bf   :  { %v253_v42 = vpop.f32.mrb[4].mxu1 }
 0x1c0   :  { %v259_v43 = vadd.f32 %v253_v42, %v2138_v39  ;;  %v1778_v44 = vpop.f32.mrb[5].mxu1 }
 0x1c1   :  { %v256_v45 = vpop.f32.mrb[6].mxu1 }
 0x1c2   :  { %v260_v46 = vmul.f32 %v259_v43, %v2140_v41  ;;  %v1779_v47 = vpop.f32.mrb[7].mxu1 }
 0x1c4   :  { %1955 = vtanh.f32 %v260_v46 }
 0x1ce   :  { %v1956_v48 = vpop.eup %1955 }
 0x1cf   :  { %v262_v50 = vmul.f32 %v1956_v48, %v2140_v41 }
 0x1d1   :  { %v263_v51 = vadd.f32 %v262_v50, %v2145_v49 }
 0x1d3   :  { %266 = vrot.lane.b32.xlu0 %v263_v51, %s2023_s5  ;;  %v264_v54 = vmul.f32 0.0, %v263_v51 }
 0x245   :  { %v267_v52 = vpop.permute.xlu0 %266 }
 0x246   :  { %v269_v53 = vmul.f32 %v267_v52, %v263_v51 }
 0x248   :  { %271 = vrot.lane.b32.xlu0 %v269_v53, %s2023_s5 }
 0x2ba   :  { %v272_v55 = vpop.permute.xlu0 %271 }
 0x2bb   :  { %v274_v56 = vadd.f32 %v272_v55, %v264_v54 }
 0x2bd   :  { %1957 = vtanh.f32 %v274_v56  ;;  %v337_v13 = vrot.slane %v274_v56, 6 }
 0x2c7   :  { %v1958_v57 = vpop.eup %1957 }
 0x2c8   :  { %277 = vrot.lane.b32.xlu1 %v1958_v57, %s2023_s5 }
 0x33a   :  { %v278_v58 = vpop.permute.xlu1 %277 }
 0x33b   :  { %v2152_v59 = vmul.f32 %v278_v58, %v263_v51 }
 0x33d   :  { %v281_v60 = vpack.c.bf16 %v2152_v59, %v2152_v59 }
 0x33f   :  { %283 = vrot.lane.b32.xlu1 %v281_v60, %s2024_s22 }
 0x3b1   :  { %v284_v61 = vpop.permute.xlu1 %283 }
 0x3b2   :  { %1785 = vmatmul.mubr.msk.bf16.vlgmr.msra.gmra.mrb[8].mxu1 %vm139_vm3, %v284_v61 }
 0x3b3   :  { %1797 = vmatpush3.bf16.msra.mxu1 %v2097_v10  ;;  %1800 = vmatprep.mubr.msk.bf16.mxu1 %vm2020_vm2, %v2019_v11 }
 0x3b4   :  { %1798 = vmatprep.subr.bf16.mxu1 %v2019_v11 }
 0x3b7   :  { %1799 = vmatpush3.bf16.msra.mxu1 %v2106_v12 }
 0x3b8   :  { %1812 = vmatprep.subr.bf16.mxu1 %v2019_v11 }
 0x485   :  { %v322_v62 = vpop.f32.mrb[8].mxu1 }
 0x486   :  { %v329_v63 = vrot.slane %v322_v62, 6  ;;  %v1786_v0 = vpop.f32.mrb[9].mxu1 }
 0x487   :  { %v325_v1 = vpop.f32.mrb[10].mxu1 }
 0x488   :  { %v331_v2 = vadd.f32 %v329_v63, %v2138_v39  ;;  %v1787_v3 = vpop.f32.mrb[11].mxu1 }
 0x48a   :  { %v332_v4 = vmul.f32 %v331_v2, %v2140_v41 }
 0x48c   :  { %1959 = vtanh.f32 %v332_v4 }
 0x496   :  { %v1960_v5 = vpop.eup %1959 }
 0x497   :  { %v334_v6 = vmul.f32 %v1960_v5, %v2140_v41 }
 0x499   :  { %v335_v7 = vadd.f32 %v334_v6, %v2145_v49 }
 0x49b   :  { %341 = vrot.lane.b32.xlu0 %v335_v7, %s2023_s5  ;;  %v339_v14 = vmul.f32 %v337_v13, %v335_v7 }
 0x50d   :  { %v342_v8 = vpop.permute.xlu0 %341 }
 0x50e   :  { %v344_v9 = vmul.f32 %v342_v8, %v335_v7 }
 0x510   :  { %346 = vrot.lane.b32.xlu1 %v344_v9, %s2023_s5 }
 0x582   :  { %v347_v15 = vpop.permute.xlu1 %346 }
 0x583   :  { %v349_v16 = vadd.f32 %v347_v15, %v339_v14 }
 0x585   :  { %1961 = vtanh.f32 %v349_v16  ;;  %v413_v37 = vrot.slane %v349_v16, 6 }
 0x58f   :  { %v1962_v17 = vpop.eup %1961 }
 0x590   :  { %352 = vrot.lane.b32.xlu0 %v1962_v17, %s2023_s5 }
 0x602   :  { %v353_v18 = vpop.permute.xlu0 %352 }
 0x603   :  { %v355_v19 = vmul.f32 %v353_v18, %v335_v7 }
 0x605   :  { %v356_v20 = vpack.c.bf16 %v355_v19, %v355_v19  ;;  %v1409_v47 = vsel %vm1408_vm5, %v2152_v59, %v355_v19 }
 0x607   :  { %v358_v21 = vrot.slane %v356_v20, 1 }
 0x609   :  { %359 = vrot.lane.b32.xlu1 %v358_v21, %s2024_s22 }
 0x67b   :  { %v360_v22 = vpop.permute.xlu1 %359 }
 0x67c   :  { %1793 = vmatmul.mubr.msk.bf16.vlgmr.msra.gmra.mrb[4].mxu0 %vm139_vm3, %v360_v22 }
 0x67d   :  { %1805 = vmatpush3.bf16.msra.mxu0 %v2097_v10  ;;  %1808 = vmatprep.mubr.msk.bf16.mxu0 %vm2020_vm2, %v2019_v11 }
 0x67e   :  { %1806 = vmatprep.subr.bf16.mxu0 %v2019_v11 }
 0x681   :  { %1807 = vmatpush3.bf16.msra.mxu0 %v2106_v12 }
 0x682   :  { %1820 = vmatprep.subr.bf16.mxu0 %v2019_v11 }
 0x74f   :  { %v398_v23 = vpop.f32.mrb[4].mxu0 }
 0x750   :  { %v405_v24 = vrot.slane %v398_v23, 4  ;;  %v1794_v25 = vpop.f32.mrb[5].mxu0 }
 0x751   :  { %v401_v26 = vpop.f32.mrb[6].mxu0 }
 0x752   :  { %v407_v27 = vadd.f32 %v405_v24, %v2138_v39  ;;  %v1795_v28 = vpop.f32.mrb[7].mxu0 }
 0x754   :  { %v408_v29 = vmul.f32 %v407_v27, %v2140_v41 }
 0x756   :  { %1963 = vtanh.f32 %v408_v29 }
 0x760   :  { %v1964_v30 = vpop.eup %1963 }
 0x761   :  { %v410_v31 = vmul.f32 %v1964_v30, %v2140_v41 }
 0x763   :  { %v411_v33 = vadd.f32 %v410_v31, %v2145_v49 }
 0x765   :  { %417 = vrot.lane.b32.xlu0 %v411_v33, %s2023_s5  ;;  %v415_v40 = vmul.f32 %v413_v37, %v411_v33 }
 0x7d7   :  { %v418_v34 = vpop.permute.xlu0 %417 }
 0x7d8   :  { %v420_v35 = vmul.f32 %v418_v34, %v411_v33 }
 0x7da   :  { %422 = vrot.lane.b32.xlu1 %v420_v35, %s2023_s5 }
 0x84c   :  { %v423_v42 = vpop.permute.xlu1 %422 }
 0x84d   :  { %v425_v43 = vadd.f32 %v423_v42, %v415_v40 }
 0x84f   :  { %1965 = vtanh.f32 %v425_v43  ;;  %v489_v1 = vrot.slane %v425_v43, 6 }
 0x859   :  { %v1966_v44 = vpop.eup %1965 }
 0x85a   :  { %428 = vrot.lane.b32.xlu0 %v1966_v44, %s2023_s5 }
 0x8cc   :  { %v429_v45 = vpop.permute.xlu0 %428 }
 0x8cd   :  { %v431_v46 = vmul.f32 %v429_v45, %v411_v33 }
 0x8cf   :  { %v432_v48 = vpack.c.bf16 %v431_v46, %v431_v46  ;;  %v1411_v50 = vsel %vm1410_vm6, %v1409_v47, %v431_v46 }
 0x8d1   :  { %v434_v51 = vrot.slane %v432_v48, 2 }
 0x8d3   :  { %435 = vrot.lane.b32.xlu1 %v434_v51, %s2024_s22 }
 0x945   :  { %v436_v52 = vpop.permute.xlu1 %435 }
 0x946   :  { %1801 = vmatmul.mubr.msk.bf16.vlgmr.msra.gmra.mrb[12].mxu1 %vm139_vm3, %v436_v52 }
 0x947   :  { %1813 = vmatpush3.bf16.msra.mxu1 %v2097_v10  ;;  %1816 = vmatprep.mubr.msk.bf16.mxu1 %vm2020_vm2, %v2019_v11 }
 0x948   :  { %1814 = vmatprep.subr.bf16.mxu1 %v2019_v11 }
 0x94b   :  { %1815 = vmatpush3.bf16.msra.mxu1 %v2106_v12 }
 0x94c   :  { %1828 = vmatprep.subr.bf16.mxu1 %v2019_v11 }
 0xa19   :  { %v474_v53 = vpop.f32.mrb[12].mxu1 }
 0xa1a   :  { %v481_v54 = vrot.slane %v474_v53, 2  ;;  %v1802_v55 = vpop.f32.mrb[13].mxu1 }
 0xa1b   :  { %v477_v56 = vpop.f32.mrb[14].mxu1 }
 0xa1c   :  { %v483_v57 = vadd.f32 %v481_v54, %v2138_v39  ;;  %v1803_v58 = vpop.f32.mrb[15].mxu1 }
 0xa1e   :  { %v484_v59 = vmul.f32 %v483_v57, %v2140_v41 }
 0xa20   :  { %1967 = vtanh.f32 %v484_v59 }
 0xa2a   :  { %v1968_v60 = vpop.eup %1967 }
 0xa2b   :  { %v486_v61 = vmul.f32 %v1968_v60, %v2140_v41 }
 0xa2d   :  { %v487_v62 = vadd.f32 %v486_v61, %v2145_v49 }
 0xa2f   :  { %493 = vrot.lane.b32.xlu0 %v487_v62, %s2023_s5  ;;  %v491_v2 = vmul.f32 %v489_v1, %v487_v62 }
 0xaa1   :  { %v494_v63 = vpop.permute.xlu0 %493 }
 0xaa2   :  { %v496_v0 = vmul.f32 %v494_v63, %v487_v62 }
 0xaa4   :  { %498 = vrot.lane.b32.xlu1 %v496_v0, %s2023_s5 }
 0xb16   :  { %v499_v3 = vpop.permute.xlu1 %498 }
 0xb17   :  { %v501_v4 = vadd.f32 %v499_v3, %v491_v2 }
 0xb19   :  { %1969 = vtanh.f32 %v501_v4  ;;  %v562_v25 = vrot.slane %v501_v4, 6 }
 0xb23   :  { %v1970_v39 = vpop.eup %1969 }
 0xb24   :  { %504 = vrot.lane.b32.xlu0 %v1970_v39, %s2023_s5 }
 0xb96   :  { %v505_v5 = vpop.permute.xlu0 %504 }
 0xb97   :  { %v507_v6 = vmul.f32 %v505_v5, %v487_v62 }
 0xb99   :  { %v508_v7 = vpack.c.bf16 %v507_v6, %v507_v6  ;;  %v2205_v8 = vsel %vm57_vm0, %v1411_v50, %v507_v6 }
 0xb9b   :  { %v510_v9 = vrot.slane %v508_v7, 3 }
 0xb9d   :  { %511 = vrot.lane.b32.xlu1 %v510_v9, %s2024_s22 }
 0xc0f   :  { %v512_v13 = vpop.permute.xlu1 %511 }
 0xc10   :  { %1809 = vmatmul.mubr.msk.bf16.vlgmr.msra.gmra.mrb[8].mxu0 %vm139_vm3, %v512_v13 }
 0xc11   :  { %1821 = vmatpush3.bf16.msra.mxu0 %v2097_v10  ;;  %1824 = vmatprep.mubr.msk.bf16.mxu0 %vm2020_vm2, %v2019_v11 }
 0xc12   :  { %1822 = vmatprep.subr.bf16.mxu0 %v2019_v11 }
 0xc15   :  { %1823 = vmatpush3.bf16.msra.mxu0 %v2106_v12 }
 0xc16   :  { %1836 = vmatprep.subr.bf16.mxu0 %v2019_v11 }
 0xce3   :  { %v550_v14 = vpop.f32.mrb[8].mxu0 }
 0xce4   :  { %v556_v15 = vadd.f32 %v550_v14, %v2136_v38  ;;  %v1810_v16 = vpop.f32.mrb[9].mxu0 }
 0xce5   :  { %v553_v17 = vpop.f32.mrb[10].mxu0 }
 0xce6   :  { %v557_v18 = vmul.f32 %v556_v15, %v2140_v41  ;;  %v1811_v19 = vpop.f32.mrb[11].mxu0 }
 0xce8   :  { %1971 = vtanh.f32 %v557_v18 }
 0xcf2   :  { %v1972_v20 = vpop.eup %1971 }
 0xcf3   :  { %v559_v21 = vmul.f32 %v1972_v20, %v2140_v41 }
 0xcf5   :  { %v560_v22 = vadd.f32 %v559_v21, %v2145_v49 }
 0xcf7   :  { %566 = vrot.lane.b32.xlu0 %v560_v22, %s2023_s5  ;;  %v564_v26 = vmul.f32 %v562_v25, %v560_v22 }
 0xd69   :  { %v567_v23 = vpop.permute.xlu0 %566 }
 0xd6a   :  { %v569_v24 = vmul.f32 %v567_v23, %v560_v22 }
 0xd6c   :  { %571 = vrot.lane.b32.xlu1 %v569_v24, %s2023_s5 }
 0xdde   :  { %v572_v27 = vpop.permute.xlu1 %571 }
 0xddf   :  { %v574_v28 = vadd.f32 %v572_v27, %v564_v26 }
 0xde1   :  { %1973 = vtanh.f32 %v574_v28  ;;  %v637_v52 = vrot.slane %v574_v28, 6 }
 0xdeb   :  { %v1974_v29 = vpop.eup %1973 }
 0xdec   :  { %577 = vrot.lane.b32.xlu0 %v1974_v29, %s2023_s5 }
 0xe5e   :  { %v578_v30 = vpop.permute.xlu0 %577 }
 0xe5f   :  { %v2222_v31 = vmul.f32 %v578_v30, %v560_v22 }
 0xe61   :  { %v581_v33 = vpack.c.bf16 %v2222_v31, %v2222_v31 }
 0xe63   :  { %583 = vrot.lane.b32.xlu1 %v581_v33, %s2024_s22 }
 0xed5   :  { %v584_v34 = vpop.permute.xlu1 %583 }
 0xed6   :  { %1817 = vmatmul.mubr.msk.bf16.vlgmr.msra.gmra.mrb[16].mxu1 %vm139_vm3, %v584_v34 }
 0xed7   :  { %1829 = vmatpush3.bf16.msra.mxu1 %v2097_v10  ;;  %1832 = vmatprep.mubr.msk.bf16.mxu1 %vm2020_vm2, %v2019_v11 }
 0xed8   :  { %1830 = vmatprep.subr.bf16.mxu1 %v2019_v11 }
 0xedb   :  { %1831 = vmatpush3.bf16.msra.mxu1 %v2106_v12 }
 0xedc   :  { %1844 = vmatprep.subr.bf16.mxu1 %v2019_v11 }
 0xfa9   :  { %v622_v35 = vpop.f32.mrb[16].mxu1 }
 0xfaa   :  { %v629_v37 = vrot.slane %v622_v35, 6  ;;  %v1818_v40 = vpop.f32.mrb[17].mxu1 }
 0xfab   :  { %v625_v42 = vpop.f32.mrb[18].mxu1 }
 0xfac   :  { %v631_v43 = vadd.f32 %v629_v37, %v2136_v38  ;;  %v1819_v44 = vpop.f32.mrb[19].mxu1 }
 0xfae   :  { %v632_v45 = vmul.f32 %v631_v43, %v2140_v41 }
 0xfb0   :  { %1975 = vtanh.f32 %v632_v45 }
 0xfba   :  { %v1976_v46 = vpop.eup %1975 }
 0xfbb   :  { %v634_v47 = vmul.f32 %v1976_v46, %v2140_v41 }
 0xfbd   :  { %v635_v48 = vadd.f32 %v634_v47, %v2145_v49 }
 0xfbf   :  { %641 = vrot.lane.b32.xlu0 %v635_v48, %s2023_s5  ;;  %v639_v53 = vmul.f32 %v637_v52, %v635_v48 }
0x1031   :  { %v642_v50 = vpop.permute.xlu0 %641 }
0x1032   :  { %v644_v51 = vmul.f32 %v642_v50, %v635_v48 }
0x1034   :  { %646 = vrot.lane.b32.xlu1 %v644_v51, %s2023_s5 }
0x10a6   :  { %v647_v54 = vpop.permute.xlu1 %646 }
0x10a7   :  { %v649_v55 = vadd.f32 %v647_v54, %v639_v53 }
0x10a9   :  { %1977 = vtanh.f32 %v649_v55  ;;  %v713_v13 = vrot.slane %v649_v55, 6 }
0x10b3   :  { %v1978_v56 = vpop.eup %1977 }
0x10b4   :  { %652 = vrot.lane.b32.xlu0 %v1978_v56, %s2023_s5 }
0x1126   :  { %v653_v57 = vpop.permute.xlu0 %652 }
0x1127   :  { %v655_v58 = vmul.f32 %v653_v57, %v635_v48 }
0x1129   :  { %v656_v59 = vpack.c.bf16 %v655_v58, %v655_v58  ;;  %v1413_v20 = vsel %vm1408_vm5, %v2222_v31, %v655_v58 }
0x112b   :  { %v658_v60 = vrot.slane %v656_v59, 1 }
0x112d   :  { %659 = vrot.lane.b32.xlu1 %v658_v60, %s2024_s22 }
0x119f   :  { %v660_v61 = vpop.permute.xlu1 %659 }
0x11a0   :  { %1825 = vmatmul.mubr.msk.bf16.vlgmr.msra.gmra.mrb[12].mxu0 %vm139_vm3, %v660_v61 }
0x11a1   :  { %1837 = vmatpush3.bf16.msra.mxu0 %v2097_v10  ;;  %1840 = vmatprep.mubr.msk.bf16.mxu0 %vm2020_vm2, %v2019_v11 }
0x11a2   :  { %1838 = vmatprep.subr.bf16.mxu0 %v2019_v11 }
0x11a5   :  { %1839 = vmatpush3.bf16.msra.mxu0 %v2106_v12 }
0x11a6   :  { %1852 = vmatprep.subr.bf16.mxu0 %v2019_v11 }
0x1273   :  { %v698_v62 = vpop.f32.mrb[12].mxu0 }
0x1274   :  { %v705_v63 = vrot.slane %v698_v62, 4  ;;  %v1826_v0 = vpop.f32.mrb[13].mxu0 }
0x1275   :  { %v701_v1 = vpop.f32.mrb[14].mxu0 }
0x1276   :  { %v707_v2 = vadd.f32 %v705_v63, %v2136_v38  ;;  %v1827_v3 = vpop.f32.mrb[15].mxu0 }
0x1278   :  { %v708_v4 = vmul.f32 %v707_v2, %v2140_v41 }
0x127a   :  { %1979 = vtanh.f32 %v708_v4 }
0x1284   :  { %v1980_v39 = vpop.eup %1979 }
0x1285   :  { %v710_v5 = vmul.f32 %v1980_v39, %v2140_v41 }
0x1287   :  { %v711_v6 = vadd.f32 %v710_v5, %v2145_v49 }
0x1289   :  { %717 = vrot.lane.b32.xlu0 %v711_v6, %s2023_s5  ;;  %v715_v14 = vmul.f32 %v713_v13, %v711_v6 }
0x12fb   :  { %v718_v7 = vpop.permute.xlu0 %717 }
0x12fc   :  { %v720_v9 = vmul.f32 %v718_v7, %v711_v6 }
0x12fe   :  { %722 = vrot.lane.b32.xlu1 %v720_v9, %s2023_s5 }
0x1370   :  { %v723_v15 = vpop.permute.xlu1 %722 }
0x1371   :  { %v725_v16 = vadd.f32 %v723_v15, %v715_v14 }
0x1373   :  { %1981 = vtanh.f32 %v725_v16  ;;  %v789_v42 = vrot.slane %v725_v16, 6 }
0x137d   :  { %v1982_v17 = vpop.eup %1981 }
0x137e   :  { %728 = vrot.lane.b32.xlu0 %v1982_v17, %s2023_s5 }
0x13f0   :  { %v729_v18 = vpop.permute.xlu0 %728 }
0x13f1   :  { %v731_v19 = vmul.f32 %v729_v18, %v711_v6 }
0x13f3   :  { %v732_v21 = vpack.c.bf16 %v731_v19, %v731_v19  ;;  %v1414_v22 = vsel %vm1410_vm6, %v1413_v20, %v731_v19 }
0x13f5   :  { %v734_v23 = vrot.slane %v732_v21, 2 }
0x13f7   :  { %735 = vrot.lane.b32.xlu1 %v734_v23, %s2024_s22 }
0x1469   :  { %v736_v24 = vpop.permute.xlu1 %735 }
0x146a   :  { %1833 = vmatmul.mubr.msk.bf16.vlgmr.msra.gmra.mrb[20].mxu1 %vm139_vm3, %v736_v24 }
0x146b   :  { %1845 = vmatpush3.bf16.msra.mxu1 %v2097_v10  ;;  %1848 = vmatprep.mubr.msk.bf16.mxu1 %vm2020_vm2, %v2019_v11 }
0x146c   :  { %1846 = vmatprep.subr.bf16.mxu1 %v2019_v11 }
0x146f   :  { %1847 = vmatpush3.bf16.msra.mxu1 %v2106_v12 }
0x1470   :  { %1860 = vmatprep.subr.bf16.mxu1 %v2019_v11 }
0x153d   :  { %v774_v25 = vpop.f32.mrb[20].mxu1 }
0x153e   :  { %v781_v26 = vrot.slane %v774_v25, 2  ;;  %v1834_v27 = vpop.f32.mrb[21].mxu1 }
0x153f   :  { %v777_v28 = vpop.f32.mrb[22].mxu1 }
0x1540   :  { %v783_v29 = vadd.f32 %v781_v26, %v2136_v38  ;;  %v1835_v30 = vpop.f32.mrb[23].mxu1 }
0x1542   :  { %v784_v31 = vmul.f32 %v783_v29, %v2140_v41 }
0x1544   :  { %1983 = vtanh.f32 %v784_v31 }
0x154e   :  { %v1984_v33 = vpop.eup %1983 }
0x154f   :  { %v786_v34 = vmul.f32 %v1984_v33, %v2140_v41 }
0x1551   :  { %v787_v35 = vadd.f32 %v786_v34, %v2145_v49 }
0x1553   :  { %793 = vrot.lane.b32.xlu0 %v787_v35, %s2023_s5  ;;  %v791_v43 = vmul.f32 %v789_v42, %v787_v35 }
0x15c5   :  { %v794_v37 = vpop.permute.xlu0 %793 }
0x15c6   :  { %v796_v40 = vmul.f32 %v794_v37, %v787_v35 }
0x15c8   :  { %798 = vrot.lane.b32.xlu1 %v796_v40, %s2023_s5 }
0x163a   :  { %v799_v44 = vpop.permute.xlu1 %798 }
0x163b   :  { %v801_v45 = vadd.f32 %v799_v44, %v791_v43 }
0x163d   :  { %1985 = vtanh.f32 %v801_v45  ;;  %v862_v0 = vrot.slane %v801_v45, 6 }
0x1647   :  { %v1986_v38 = vpop.eup %1985 }
0x1648   :  { %804 = vrot.lane.b32.xlu0 %v1986_v38, %s2023_s5 }
0x16ba   :  { %v805_v46 = vpop.permute.xlu0 %804 }
0x16bb   :  { %v807_v47 = vmul.f32 %v805_v46, %v787_v35 }
0x16bd   :  { %v808_v48 = vpack.c.bf16 %v807_v47, %v807_v47  ;;  %v2275_v50 = vsel %vm57_vm0, %v1414_v22, %v807_v47 }
0x16bf   :  { %v810_v51 = vrot.slane %v808_v48, 3 }
0x16c1   :  { %811 = vrot.lane.b32.xlu1 %v810_v51, %s2024_s22 }
0x1733   :  { %v812_v52 = vpop.permute.xlu1 %811 }
0x1734   :  { %1841 = vmatmul.mubr.msk.bf16.vlgmr.msra.gmra.mrb[16].mxu0 %vm139_vm3, %v812_v52 }
0x1735   :  { %1853 = vmatpush3.bf16.msra.mxu0 %v2097_v10  ;;  %1856 = vmatprep.mubr.msk.bf16.mxu0 %vm2020_vm2, %v2019_v11 }
0x1736   :  { %1854 = vmatprep.subr.bf16.mxu0 %v2019_v11 }
0x1739   :  { %1855 = vmatpush3.bf16.msra.mxu0 %v2106_v12 }
0x173a   :  { %1868 = vmatprep.subr.bf16.mxu0 %v2019_v11 }
0x1807   :  { %v850_v53 = vpop.f32.mrb[16].mxu0 }
0x1808   :  { %v856_v54 = vadd.f32 %v850_v53, %v2132_v32  ;;  %v1842_v55 = vpop.f32.mrb[17].mxu0 }
0x1809   :  { %v853_v56 = vpop.f32.mrb[18].mxu0 }
0x180a   :  { %v857_v57 = vmul.f32 %v856_v54, %v2140_v41  ;;  %v1843_v58 = vpop.f32.mrb[19].mxu0 }
0x180c   :  { %1987 = vtanh.f32 %v857_v57 }
0x1816   :  { %v1988_v59 = vpop.eup %1987 }
0x1817   :  { %v859_v60 = vmul.f32 %v1988_v59, %v2140_v41 }
0x1819   :  { %v860_v61 = vadd.f32 %v859_v60, %v2145_v49 }
0x181b   :  { %866 = vrot.lane.b32.xlu0 %v860_v61, %s2023_s5  ;;  %v864_v1 = vmul.f32 %v862_v0, %v860_v61 }
0x188d   :  { %v867_v62 = vpop.permute.xlu0 %866 }
0x188e   :  { %v869_v63 = vmul.f32 %v867_v62, %v860_v61 }
0x1890   :  { %871 = vrot.lane.b32.xlu1 %v869_v63, %s2023_s5 }
0x1902   :  { %v872_v2 = vpop.permute.xlu1 %871 }
0x1903   :  { %v874_v3 = vadd.f32 %v872_v2, %v864_v1 }
0x1905   :  { %1989 = vtanh.f32 %v874_v3  ;;  %v937_v24 = vrot.slane %v874_v3, 6 }
0x190f   :  { %v1990_v4 = vpop.eup %1989 }
0x1910   :  { %877 = vrot.lane.b32.xlu0 %v1990_v4, %s2023_s5 }
0x1982   :  { %v878_v39 = vpop.permute.xlu0 %877 }
0x1983   :  { %v2292_v5 = vmul.f32 %v878_v39, %v860_v61 }
0x1985   :  { %v881_v6 = vpack.c.bf16 %v2292_v5, %v2292_v5 }
0x1987   :  { %883 = vrot.lane.b32.xlu1 %v881_v6, %s2024_s22 }
0x19f9   :  { %v884_v7 = vpop.permute.xlu1 %883 }
0x19fa   :  { %1849 = vmatmul.mubr.msk.bf16.vlgmr.msra.gmra.mrb[24].mxu1 %vm139_vm3, %v884_v7 }
0x19fb   :  { %1861 = vmatpush3.bf16.msra.mxu1 %v2097_v10  ;;  %1864 = vmatprep.mubr.msk.bf16.mxu1 %vm2020_vm2, %v2019_v11 }
0x19fc   :  { %1862 = vmatprep.subr.bf16.mxu1 %v2019_v11 }
0x19ff   :  { %1863 = vmatpush3.bf16.msra.mxu1 %v2106_v12 }
0x1a00   :  { %1876 = vmatprep.subr.bf16.mxu1 %v2019_v11 }
0x1acd   :  { %v922_v9 = vpop.f32.mrb[24].mxu1 }
0x1ace   :  { %v929_v13 = vrot.slane %v922_v9, 6  ;;  %v1850_v14 = vpop.f32.mrb[25].mxu1 }
0x1acf   :  { %v925_v15 = vpop.f32.mrb[26].mxu1 }
0x1ad0   :  { %v931_v16 = vadd.f32 %v929_v13, %v2132_v32  ;;  %v1851_v17 = vpop.f32.mrb[27].mxu1 }
0x1ad2   :  { %v932_v18 = vmul.f32 %v931_v16, %v2140_v41 }
0x1ad4   :  { %1991 = vtanh.f32 %v932_v18 }
0x1ade   :  { %v1992_v19 = vpop.eup %1991 }
0x1adf   :  { %v934_v20 = vmul.f32 %v1992_v19, %v2140_v41 }
0x1ae1   :  { %v935_v21 = vadd.f32 %v934_v20, %v2145_v49 }
0x1ae3   :  { %941 = vrot.lane.b32.xlu0 %v935_v21, %s2023_s5  ;;  %v939_v25 = vmul.f32 %v937_v24, %v935_v21 }
0x1b55   :  { %v942_v22 = vpop.permute.xlu0 %941 }
0x1b56   :  { %v944_v23 = vmul.f32 %v942_v22, %v935_v21 }
0x1b58   :  { %946 = vrot.lane.b32.xlu1 %v944_v23, %s2023_s5 }
0x1bca   :  { %v947_v26 = vpop.permute.xlu1 %946 }
0x1bcb   :  { %v949_v27 = vadd.f32 %v947_v26, %v939_v25 }
0x1bcd   :  { %1993 = vtanh.f32 %v949_v27  ;;  %v1013_v52 = vrot.slane %v949_v27, 6 }
0x1bd7   :  { %v1994_v28 = vpop.eup %1993 }
0x1bd8   :  { %952 = vrot.lane.b32.xlu0 %v1994_v28, %s2023_s5 }
0x1c4a   :  { %v953_v29 = vpop.permute.xlu0 %952 }
0x1c4b   :  { %v955_v30 = vmul.f32 %v953_v29, %v935_v21 }
0x1c4d   :  { %v956_v31 = vpack.c.bf16 %v955_v30, %v955_v30  ;;  %v1416_v59 = vsel %vm1408_vm5, %v2292_v5, %v955_v30 }
0x1c4f   :  { %v958_v33 = vrot.slane %v956_v31, 1 }
0x1c51   :  { %959 = vrot.lane.b32.xlu1 %v958_v33, %s2024_s22 }
0x1cc3   :  { %v960_v34 = vpop.permute.xlu1 %959 }
0x1cc4   :  { %1857 = vmatmul.mubr.msk.bf16.vlgmr.msra.gmra.mrb[20].mxu0 %vm139_vm3, %v960_v34 }
0x1cc5   :  { %1869 = vmatpush3.bf16.msra.mxu0 %v2097_v10  ;;  %1872 = vmatprep.mubr.msk.bf16.mxu0 %vm2020_vm2, %v2019_v11 }
0x1cc6   :  { %1870 = vmatprep.subr.bf16.mxu0 %v2019_v11 }
0x1cc9   :  { %1871 = vmatpush3.bf16.msra.mxu0 %v2106_v12 }
0x1cca   :  { %1884 = vmatprep.subr.bf16.mxu0 %v2019_v11 }
0x1d97   :  { %v998_v35 = vpop.f32.mrb[20].mxu0 }
0x1d98   :  { %v1005_v37 = vrot.slane %v998_v35, 4  ;;  %v1858_v40 = vpop.f32.mrb[21].mxu0 }
0x1d99   :  { %v1001_v42 = vpop.f32.mrb[22].mxu0 }
0x1d9a   :  { %v1007_v43 = vadd.f32 %v1005_v37, %v2132_v32  ;;  %v1859_v44 = vpop.f32.mrb[23].mxu0 }
0x1d9c   :  { %v1008_v45 = vmul.f32 %v1007_v43, %v2140_v41 }
0x1d9e   :  { %1995 = vtanh.f32 %v1008_v45 }
0x1da8   :  { %v1996_v38 = vpop.eup %1995 }
0x1da9   :  { %v1010_v46 = vmul.f32 %v1996_v38, %v2140_v41 }
0x1dab   :  { %v1011_v47 = vadd.f32 %v1010_v46, %v2145_v49 }
0x1dad   :  { %1017 = vrot.lane.b32.xlu0 %v1011_v47, %s2023_s5  ;;  %v1015_v53 = vmul.f32 %v1013_v52, %v1011_v47 }
0x1e1f   :  { %v1018_v48 = vpop.permute.xlu0 %1017 }
0x1e20   :  { %v1020_v51 = vmul.f32 %v1018_v48, %v1011_v47 }
0x1e22   :  { %1022 = vrot.lane.b32.xlu1 %v1020_v51, %s2023_s5 }
0x1e94   :  { %v1023_v54 = vpop.permute.xlu1 %1022 }
0x1e95   :  { %v1025_v55 = vadd.f32 %v1023_v54, %v1015_v53 }
0x1e97   :  { %1997 = vtanh.f32 %v1025_v55  ;;  %v1089_v15 = vrot.slane %v1025_v55, 6 }
0x1ea1   :  { %v1998_v56 = vpop.eup %1997 }
0x1ea2   :  { %1028 = vrot.lane.b32.xlu0 %v1998_v56, %s2023_s5 }
0x1f14   :  { %v1029_v57 = vpop.permute.xlu0 %1028 }
0x1f15   :  { %v1031_v58 = vmul.f32 %v1029_v57, %v1011_v47 }
0x1f17   :  { %v1032_v60 = vpack.c.bf16 %v1031_v58, %v1031_v58  ;;  %v1417_v61 = vsel %vm1410_vm6, %v1416_v59, %v1031_v58 }
0x1f19   :  { %v1034_v62 = vrot.slane %v1032_v60, 2 }
0x1f1b   :  { %1035 = vrot.lane.b32.xlu1 %v1034_v62, %s2024_s22 }
0x1f8d   :  { %v1036_v63 = vpop.permute.xlu1 %1035 }
0x1f8e   :  { %1865 = vmatmul.mubr.msk.bf16.vlgmr.msra.gmra.mrb[28].mxu1 %vm139_vm3, %v1036_v63 }
0x1f8f   :  { %1877 = vmatpush3.bf16.msra.mxu1 %v2097_v10  ;;  %1880 = vmatprep.mubr.msk.bf16.mxu1 %vm2020_vm2, %v2019_v11 }
0x1f90   :  { %1878 = vmatprep.subr.bf16.mxu1 %v2019_v11 }
0x1f93   :  { %1879 = vmatpush3.bf16.msra.mxu1 %v2106_v12 }
0x1f94   :  { %1892 = vmatprep.subr.bf16.mxu1 %v2019_v11 }
0x2061   :  { %v1074_v0 = vpop.f32.mrb[28].mxu1 }
0x2062   :  { %v1081_v1 = vrot.slane %v1074_v0, 2  ;;  %v1866_v2 = vpop.f32.mrb[29].mxu1 }
0x2063   :  { %v1077_v3 = vpop.f32.mrb[30].mxu1 }
0x2064   :  { %v1083_v4 = vadd.f32 %v1081_v1, %v2132_v32  ;;  %v1867_v39 = vpop.f32.mrb[31].mxu1 }
0x2066   :  { %v1084_v5 = vmul.f32 %v1083_v4, %v2140_v41 }
0x2068   :  { %1999 = vtanh.f32 %v1084_v5 }
0x2072   :  { %v2000_v6 = vpop.eup %1999 }
0x2073   :  { %v1086_v7 = vmul.f32 %v2000_v6, %v2140_v41 }
0x2075   :  { %v1087_v9 = vadd.f32 %v1086_v7, %v2145_v49 }
0x2077   :  { %1093 = vrot.lane.b32.xlu0 %v1087_v9, %s2023_s5  ;;  %v1091_v16 = vmul.f32 %v1089_v15, %v1087_v9 }
0x20e9   :  { %v1094_v13 = vpop.permute.xlu0 %1093 }
0x20ea   :  { %v1096_v14 = vmul.f32 %v1094_v13, %v1087_v9 }
0x20ec   :  { %1098 = vrot.lane.b32.xlu1 %v1096_v14, %s2023_s5 }
0x215e   :  { %v1099_v17 = vpop.permute.xlu1 %1098 }
0x215f   :  { %v1101_v18 = vadd.f32 %v1099_v17, %v1091_v16 }
0x2161   :  { %2001 = vtanh.f32 %v1101_v18  ;;  %v1162_v40 = vrot.slane %v1101_v18, 6 }
0x216b   :  { %v2002_v32 = vpop.eup %2001 }
0x216c   :  { %1104 = vrot.lane.b32.xlu0 %v2002_v32, %s2023_s5 }
0x21de   :  { %v1105_v19 = vpop.permute.xlu0 %1104 }
0x21df   :  { %v1107_v20 = vmul.f32 %v1105_v19, %v1087_v9 }
0x21e1   :  { %v1108_v21 = vpack.c.bf16 %v1107_v20, %v1107_v20  ;;  %v2345_v22 = vsel %vm57_vm0, %v1417_v61, %v1107_v20 }
0x21e3   :  { %v1110_v23 = vrot.slane %v1108_v21, 3 }
0x21e5   :  { %1111 = vrot.lane.b32.xlu1 %v1110_v23, %s2024_s22 }
0x2257   :  { %v1112_v24 = vpop.permute.xlu1 %1111 }
0x2258   :  { %1873 = vmatmul.mubr.msk.bf16.vlgmr.msra.gmra.mrb[24].mxu0 %vm139_vm3, %v1112_v24 }
0x2259   :  { %1885 = vmatpush3.bf16.msra.mxu0 %v2097_v10  ;;  %1888 = vmatprep.mubr.msk.bf16.mxu0 %vm2020_vm2, %v2019_v11 }
0x225a   :  { %1886 = vmatprep.subr.bf16.mxu0 %v2019_v11 }
0x225d   :  { %1887 = vmatpush3.bf16.msra.mxu0 %v2106_v12 }
0x232b   :  { %v1150_v25 = vpop.f32.mrb[24].mxu0 }
0x232c   :  { %v1156_v26 = vadd.f32 %v1150_v25, %v2134_v36  ;;  %v1874_v27 = vpop.f32.mrb[25].mxu0 }
0x232d   :  { %v1153_v28 = vpop.f32.mrb[26].mxu0 }
0x232e   :  { %v1157_v29 = vmul.f32 %v1156_v26, %v2140_v41  ;;  %v1875_v30 = vpop.f32.mrb[27].mxu0 }
0x2330   :  { %2003 = vtanh.f32 %v1157_v29 }
0x233a   :  { %v2004_v31 = vpop.eup %2003 }
0x233b   :  { %v1159_v33 = vmul.f32 %v2004_v31, %v2140_v41 }
0x233d   :  { %v1160_v34 = vadd.f32 %v1159_v33, %v2145_v49 }
0x233f   :  { %1166 = vrot.lane.b32.xlu0 %v1160_v34, %s2023_s5  ;;  %v1164_v42 = vmul.f32 %v1162_v40, %v1160_v34 }
0x23b1   :  { %v1167_v35 = vpop.permute.xlu0 %1166 }
0x23b2   :  { %v1169_v37 = vmul.f32 %v1167_v35, %v1160_v34 }
0x23b4   :  { %1171 = vrot.lane.b32.xlu1 %v1169_v37, %s2023_s5 }
0x2426   :  { %v1172_v43 = vpop.permute.xlu1 %1171 }
0x2427   :  { %v1174_v44 = vadd.f32 %v1172_v43, %v1164_v42 }
0x2429   :  { %2005 = vtanh.f32 %v1174_v44 }
0x2433   :  { %v2006_v45 = vpop.eup %2005 }
0x2434   :  { %1177 = vrot.lane.b32.xlu0 %v2006_v45, %s2023_s5 }
0x24a6   :  { %v1178_v38 = vpop.permute.xlu0 %1177 }
0x24a7   :  { %v2361_v46 = vmul.f32 %v1178_v38, %v1160_v34 }
0x24a9   :  { %v1181_v47 = vpack.c.bf16 %v2361_v46, %v2361_v46 }
0x24ab   :  { %1183 = vrot.lane.b32.xlu1 %v1181_v47, %s2024_s22  ;;  %v1427_v47 = vrot.slane %v2275_v50, 6 }
0x251d   :  { %v1184_v48 = vpop.permute.xlu1 %1183 }
0x251e   :  { %1881 = vmatmul.mubr.msk.bf16.vlgmr.msra.gmra.mrb[32].mxu1 %vm139_vm3, %v1184_v48 }
0x251f   :  { %1893 = vmatpush3.bf16.msra.mxu1 %v2097_v10  ;;  %1896 = vmatprep.mubr.msk.bf16.mxu1 %vm2020_vm2, %v2019_v11 }
0x2520   :  { %1894 = vmatprep.subr.bf16.mxu1 %v2019_v11 }
0x2523   :  { %1895 = vmatpush3.bf16.msra.mxu1 %v2106_v12  ;;  %v1237_v12 = vrot.slane %v1174_v44, 6 }
0x25f1   :  { %v1222_v51 = vpop.f32.mrb[32].mxu1 }
0x25f2   :  { %v1229_v52 = vrot.slane %v1222_v51, 6  ;;  %v1882_v53 = vpop.f32.mrb[33].mxu1  ;;  %v1426_v51 = vrot.slane %v2205_v8, 6 }
0x25f3   :  { %v1225_v54 = vpop.f32.mrb[34].mxu1 }
0x25f4   :  { %v1231_v55 = vadd.f32 %v1229_v52, %v2134_v36  ;;  %v1883_v56 = vpop.f32.mrb[35].mxu1  ;;  %v1428_v53 = vsel %vm1408_vm5, %v1426_v51, %v1427_v47 }
0x25f6   :  { %v1232_v57 = vmul.f32 %v1231_v55, %v2140_v41 }
0x25f8   :  { %2007 = vtanh.f32 %v1232_v57 }
0x2602   :  { %v2008_v58 = vpop.eup %2007 }
0x2603   :  { %v1234_v10 = vmul.f32 %v2008_v58, %v2140_v41  ;;  %v1950_v58 = vld [vmem:[%s2483_s6 + $0x8] sm:$0xff]  }
0x2605   :  { %v1235_v59 = vadd.f32 %v1234_v10, %v2145_v49  ;;  %v1951_v10 = vld [vmem:[%s2483_s6 + $0x10] sm:$0xff]  }
0x2607   :  { %1241 = vrot.lane.b32.xlu0 %v1235_v59, %s2023_s5  ;;  %v1239_v61 = vmul.f32 %v1237_v12, %v1235_v59  ;;  %v1954_v12 = vld [vmem:[%s2483_s6 + $0x28] sm:$0xff]  }
0x2679   :  { %v1242_v11 = vpop.permute.xlu0 %1241 }
0x267a   :  { %v1244_v60 = vmul.f32 %v1242_v11, %v1235_v59  ;;  %v1952_v11 = vld [vmem:[%s2483_s6 + $0x18] sm:$0xff]  }
0x267c   :  { %1246 = vrot.lane.b32.xlu1 %v1244_v60, %s2023_s5  ;;  %v1953_v60 = vld [vmem:[%s2483_s6 + $0x20] sm:$0xff]  }
0x26ee   :  { %v1247_v62 = vpop.permute.xlu1 %1246 }
0x26ef   :  { %v1249_v63 = vadd.f32 %v1247_v62, %v1239_v61 }
0x26f1   :  { %2009 = vtanh.f32 %v1249_v63  ;;  %v1313_v20 = vrot.slane %v1249_v63, 6 }
0x26fb   :  { %v2010_v0 = vpop.eup %2009 }
0x26fc   :  { %1252 = vrot.lane.b32.xlu0 %v2010_v0, %s2023_s5  ;;  %v1447_v0 = vrot.slane %v2275_v50, 2 }
0x276e   :  { %v1253_v1 = vpop.permute.xlu0 %1252 }
0x276f   :  { %v1255_v2 = vmul.f32 %v1253_v1, %v1235_v59  ;;  %v1929_v59 = vpack.i.bf16 %v2275_v50, %v2205_v8  ;;  %v1429_v1 = vrot.slane %v2345_v22, 6 }
0x2771   :  { %v1256_v3 = vpack.c.bf16 %v1255_v2, %v1255_v2  ;;  %v1419_v28 = vsel %vm1408_vm5, %v2361_v46, %v1255_v2  ;;  %v1430_v50 = vsel %vm1408_vm5, %v1427_v47, %v1429_v1 }
0x2773   :  { %v1258_v4 = vrot.slane %v1256_v3, 1  ;;  %v1449_v3 = vrot.slane %v2345_v22, 2 }
0x2775   :  { %1259 = vrot.lane.b32.xlu1 %v1258_v4, %s2024_s22 }
0x27e7   :  { %v1260_v39 = vpop.permute.xlu1 %1259 }
0x27e8   :  { %1889 = vmatmul.mubr.msk.bf16.vlgmr.msra.gmra.mrb[28].mxu0 %vm139_vm3, %v1260_v39  ;;  %v1446_v39 = vrot.slane %v2205_v8, 2 }
0x28bb   :  { %v1298_v5 = vpop.f32.mrb[28].mxu0 }
0x28bc   :  { %v1305_v6 = vrot.slane %v1298_v5, 4  ;;  %v1890_v7 = vpop.f32.mrb[29].mxu0 }
0x28bd   :  { %v1301_v9 = vpop.f32.mrb[30].mxu0 }
0x28be   :  { %v1307_v13 = vadd.f32 %v1305_v6, %v2134_v36  ;;  %v1891_v14 = vpop.f32.mrb[31].mxu0 }
0x28c0   :  { %v1308_v15 = vmul.f32 %v1307_v13, %v2140_v41 }
0x28c2   :  { %2011 = vtanh.f32 %v1308_v15 }
0x28cc   :  { %v2012_v16 = vpop.eup %2011 }
0x28cd   :  { %v1310_v17 = vmul.f32 %v2012_v16, %v2140_v41 }
0x28cf   :  { %v1311_v18 = vadd.f32 %v1310_v17, %v2145_v49  ;;  %v1448_v17 = vsel %vm57_vm0, %v1446_v39, %v1447_v0 }
0x28d1   :  { %1317 = vrot.lane.b32.xlu0 %v1311_v18, %s2023_s5  ;;  %v1315_v21 = vmul.f32 %v1313_v20, %v1311_v18 }
0x2943   :  { %v1318_v32 = vpop.permute.xlu0 %1317 }
0x2944   :  { %v1320_v19 = vmul.f32 %v1318_v32, %v1311_v18 }
0x2946   :  { %1322 = vrot.lane.b32.xlu1 %v1320_v19, %s2023_s5 }
0x29b8   :  { %v1323_v23 = vpop.permute.xlu1 %1322 }
0x29b9   :  { %v1325_v24 = vadd.f32 %v1323_v23, %v1315_v21 }
0x29bb   :  { %2013 = vtanh.f32 %v1325_v24  ;;  %v1389_v54 = vrot.slane %v1325_v24, 6 }
0x29c5   :  { %v2014_v25 = vpop.eup %2013 }
0x29c6   :  { %1328 = vrot.lane.b32.xlu0 %v2014_v25, %s2023_s5 }
0x2a38   :  { %v1329_v26 = vpop.permute.xlu0 %1328 }
0x2a39   :  { %v1331_v27 = vmul.f32 %v1329_v26, %v1311_v18 }
0x2a3b   :  { %v1332_v29 = vpack.c.bf16 %v1331_v27, %v1331_v27  ;;  %v1420_v30 = vsel %vm1410_vm6, %v1419_v28, %v1331_v27 }
0x2a3d   :  { %v1334_v31 = vrot.slane %v1332_v29, 2 }
0x2a3f   :  { %1335 = vrot.lane.b32.xlu1 %v1334_v31, %s2024_s22 }
0x2ab1   :  { %v1336_v33 = vpop.permute.xlu1 %1335 }
0x2ab2   :  { %1897 = vmatmul.mubr.msk.bf16.vlgmr.msra.gmra.mrb[36].mxu1 %vm139_vm3, %v1336_v33 }
0x2b85   :  { %v1374_v34 = vpop.f32.mrb[36].mxu1 }
0x2b86   :  { %v1381_v35 = vrot.slane %v1374_v34, 2  ;;  %v1898_v37 = vpop.f32.mrb[37].mxu1 }
0x2b87   :  { %v1377_v40 = vpop.f32.mrb[38].mxu1 }
0x2b88   :  { %v1383_v42 = vadd.f32 %v1381_v35, %v2134_v36  ;;  %v1899_v43 = vpop.f32.mrb[39].mxu1  ;;  %v1924_v36 = vpack.i.bf16 %v1428_v53, %v1426_v51 }
0x2b8a   :  { %v1384_v44 = vmul.f32 %v1383_v42, %v2140_v41  ;;  %v1678_v42 = vld [vmem:[%s2484_s7] ss:$0 sm:$0xff] }
0x2b8c   :  { %2015 = vtanh.f32 %v1384_v44 }
0x2b96   :  { %v2016_v45 = vpop.eup %2015 }
0x2b97   :  { %v1386_v38 = vmul.f32 %v2016_v45, %v2140_v41 }
0x2b99   :  { %v1387_v46 = vadd.f32 %v1386_v38, %v2145_v49  ;;  %v1949_v49 = vld [vmem:[%s2483_s6] sm:$0xff]  }
0x2b9a   :  { %1900 = vmatprep.subr.bf16.mxu0 %v1949_v49 }
0x2b9b   :  { %1393 = vrot.lane.b32.xlu0 %v1387_v46, %s2023_s5  ;;  %v1391_v55 = vmul.f32 %v1389_v54, %v1387_v46  ;;  %1901 = vmatpush3.bf16.msra.mxu0 %v1949_v49 }
0x2b9c   :  { %1902 = vmatprep.subr.bf16.mxu0 %v1950_v58 }
0x2b9f   :  { %1903 = vmatpush3.bf16.msra.mxu0 %v1950_v58 }
0x2ba0   :  { %1904 = vmatprep.subr.bf16.mxu0 %v1951_v10 }
0x2ba3   :  { %1905 = vmatpush3.bf16.msra.mxu0 %v1951_v10 }
0x2ba4   :  { %1906 = vmatprep.subr.bf16.mxu0 %v1952_v11 }
0x2ba7   :  { %1907 = vmatpush3.bf16.msra.mxu0 %v1952_v11 }
0x2ba8   :  { %1908 = vmatprep.subr.bf16.mxu0 %v1953_v60 }
0x2bab   :  { %1909 = vmatpush3.bf16.msra.mxu0 %v1953_v60 }
0x2bac   :  { %1910 = vmatprep.subr.bf16.mxu0 %v1954_v12 }
0x2baf   :  { %1911 = vmatpush3.bf16.msra.mxu0 %v1954_v12 }
0x2c0d   :  { %v1394_v48 = vpop.permute.xlu0 %1393 }
0x2c0e   :  { %v1396_v52 = vmul.f32 %v1394_v48, %v1387_v46 }
0x2c10   :  { %1398 = vrot.lane.b32.xlu1 %v1396_v52, %s2023_s5 }
0x2c14   :  { %1925 = vrot.lane.b32.xlu1 %v1924_v36, %s2024_s22 }
0x2c82   :  { %v1399_v41 = vpop.permute.xlu1 %1398 }
0x2c83   :  { %v1401_v56 = vadd.f32 %v1399_v41, %v1391_v55 }
0x2c85   :  { %2017 = vtanh.f32 %v1401_v56 }
0x2c86   :  { %v1926_v61 = vpop.permute.xlu1 %1925 }
0x2c87   :  { %v1927_v2 = vunpack.i.l.bf16 %v1926_v61  ;;  %v1928_v9 = vunpack.i.h.bf16 %v1926_v61 }
0x2c89   :  { %v1445_v15 = vsel %vm1408_vm5, 0.0, %v1927_v2 }
0x2c8f   :  { %v2018_v57 = vpop.eup %2017 }
0x2c90   :  { %1404 = vrot.lane.b32.xlu0 %v2018_v57, %s2023_s5 }
0x2c94   :  { %1930 = vrot.lane.b32.xlu0 %v1929_v59, %s2025_s29 }
0x2d02   :  { %v1405_v62 = vpop.permute.xlu0 %1404 }
0x2d03   :  { %v1407_v63 = vmul.f32 %v1405_v62, %v1387_v46 }
0x2d05   :  { %v1421_v4 = vsel %vm57_vm0, %v1420_v30, %v1407_v63 }
0x2d06   :  { %v1431_v5 = vrot.slane %v1421_v4, 6  ;;  %v1931_v6 = vpop.permute.xlu0 %1930  ;;  %v1939_v7 = vpack.i.bf16 %v1421_v4, %v2345_v22  ;;  %v1450_v22 = vsel %vm57_vm0, %v1447_v0, %v1449_v3  ;;  %v1451_v24 = vrot.slane %v1421_v4, 2 }
0x2d07   :  { %v1933_v13 = vunpack.i.h.bf16 %v1931_v6  ;;  %v1932_v14 = vunpack.i.l.bf16 %v1931_v6 }
0x2d08   :  { %1940 = vrot.lane.b32.xlu0 %v1939_v7, %s2025_s29  ;;  %v1432_v16 = vsel %vm1408_vm5, %v1429_v1, %v1431_v5  ;;  %v1457_v30 = vsel %vm57_vm0, %v1451_v24, 0.0  ;;  %v1452_v31 = vsel %vm57_vm0, %v1449_v3, %v1451_v24 }
0x2d09   :  { %v1471_v8 = vsel %vm139_vm3, %v1928_v9, %v1933_v13  ;;  %v1470_v18 = vsel %vm139_vm3, %v1445_v15, %v1932_v14  ;;  %v1934_v32 = vpack.i.bf16 %v1432_v16, %v1430_v50 }
0x2d0a   :  { %v1475_v19 = vsel %vm1474_vm7, %v1470_v18, %v1448_v17  ;;  %v1476_v20 = vsel %vm1474_vm7, %v1471_v8, %v1450_v22 }
0x2d0b   :  { %1935 = vrot.lane.b32.xlu1 %v1934_v32, %s2024_s22  ;;  %v1479_v21 = vpack.c.bf16 %v1476_v20, %v1475_v19 }
0x2d0d   :  { %1912 = vmatprep.mubr.msk.bf16.mxu0 %vm1536_vm8, %v1479_v21 }
0x2d7a   :  { %v1941_v23 = vpop.permute.xlu0 %1940 }
0x2d7b   :  { %v1943_v26 = vunpack.i.h.bf16 %v1941_v23  ;;  %v1942_v27 = vunpack.i.l.bf16 %v1941_v23 }
0x2d7d   :  { %v1936_v25 = vpop.permute.xlu1 %1935 }
0x2d7e   :  { %v1938_v28 = vunpack.i.h.bf16 %v1936_v25  ;;  %v1937_v29 = vunpack.i.l.bf16 %v1936_v25 }
0x2d80   :  { %v1472_v33 = vsel %vm139_vm3, %v1937_v29, %v1942_v27  ;;  %v1473_v34 = vsel %vm139_vm3, %v1938_v28, %v1943_v26 }
0x2d81   :  { %v1477_v35 = vsel %vm1474_vm7, %v1472_v33, %v1452_v31  ;;  %v1478_v37 = vsel %vm1474_vm7, %v1473_v34, %v1457_v30 }
0x2d82   :  { %v1480_v40 = vpack.c.bf16 %v1478_v37, %v1477_v35 }
0x2d84   :  { %1913 = vmatmul.mubr.msk.bf16.vlgmr.msra.gmra.mrb[32].mxu0 %vm1536_vm8, %v1480_v40 }
0x2e57   :  { %v1914_v43 = vpop.f32.mrb[32].mxu0 }
0x2e58   :  { %v1586_v44 = vadd.f32 %v1914_v43, %v1678_v42  ;;  %v1577_v45 = vpop.f32.mrb[33].mxu0 }
0x2e59   :  { %v1578_v38 = vadd.f32 %v1678_v42, %v1577_v45  ;;  %v1915_v46 = vpop.f32.mrb[34].mxu0 }
0x2e5a   :  { %v1594_v47 = vmax.f32 %v1586_v44, 0.0  ;;  %v1589_v48 = vadd.f32 %v1915_v46, %v1678_v42  ;;  %v1580_v51 = vpop.f32.mrb[35].mxu0 }
0x2e5b   :  { %v1592_v52 = vmax.f32 %v1578_v38, 0.0  ;;  %v1581_v53 = vadd.f32 %v1678_v42, %v1580_v51 }
0x2e5c   :  { %v1602_v36 = vcombine.high %v1594_v47, %v1594_v47  ;;  %v1691_v54 = vrot.slane %v1594_v47, 10  ;;  %v1595_v55 = vmax.f32 %v1589_v48, 0.0 }
0x2e5d   :  { %v1600_v41 = vcombine.high %v1592_v52, %v1592_v52  ;;  %v1687_v56 = vrot.slane %v1592_v52, 10  ;;  %v1593_v49 = vmax.f32 %v1581_v53, 0.0 }
0x2e5e   :  { %v1692_v57 = vrot.slane %v1602_v36, 10  ;;  %v1636_v58 = vmax.f32 %v1594_v47, %v1691_v54  ;;  %v1603_v10 = vcombine.high %v1595_v55, %v1595_v55  ;;  %v1693_v59 = vrot.slane %v1595_v55, 10 }
0x2e5f   :  { %v1688_v11 = vrot.slane %v1600_v41, 10  ;;  %v1632_v60 = vmax.f32 %v1592_v52, %v1687_v56  ;;  %v1601_v12 = vcombine.high %v1593_v49, %v1593_v49  ;;  %v1689_v61 = vrot.slane %v1593_v49, 10 }
0x2e60   :  { %v1637_v62 = vmax.f32 %v1602_v36, %v1692_v57  ;;  %1644 = vst [vmem:[%s2485_s8 + $0x8] sm:$0x3] %v1636_v58  ;;  %v1694_v63 = vrot.slane %v1603_v10, 10  ;;  %v1638_v0 = vmax.f32 %v1595_v55, %v1693_v59 }
0x2e61   :  { %v1633_v1 = vmax.f32 %v1600_v41, %v1688_v11  ;;  %1640 = vst [vmem:[%s2485_s8] sm:$0x3] %v1632_v60  ;;  %v1690_v2 = vrot.slane %v1601_v12, 10  ;;  %v1634_v3 = vmax.f32 %v1593_v49, %v1689_v61 }
0x2e62   :  { %1645 = vst [vmem:[%s2485_s8 + $0xa] sm:$0x3] %v1637_v62  ;;  %v1639_v4 = vmax.f32 %v1603_v10, %v1694_v63  ;;  %1646 = vst [vmem:[%s2485_s8 + $0xc] sm:$0x3] %v1638_v0 }
0x2e63   :  { %1641 = vst [vmem:[%s2485_s8 + $0x2] sm:$0x3] %v1633_v1  ;;  %v1635_v39 = vmax.f32 %v1601_v12, %v1690_v2  ;;  %1642 = vst [vmem:[%s2485_s8 + $0x4] sm:$0x3] %v1634_v3 }
0x2e64   :  { %1647 = vst [vmem:[%s2485_s8 + $0xe] sm:$0x3] %v1639_v4 }
0x2e65   :  { %1643 = vst [vmem:[%s2485_s8 + $0x6] sm:$0x3] %v1635_v39 }

</bundles_post_ra>
